<compile_context>
chip_gen: v7x
topology: tpu7x:2x2x1
jax: 0.10.0
libtpu: 0.0.40
codegen_flags: <defaults>
</compile_context>

<pallas_src>
import jax
import jax.numpy as jnp
from jax import lax
from jax.experimental import pallas as pl
from jax.experimental.pallas import tpu as pltpu


# ----------------------------- Pallas kernel --------------------------------

def make_fused_lstm_kernel(T, Bp, H, num_layers):
    """Fused multi-layer LSTM + LayerNorm + Linear head.

    Ref layout (whole-array VMEM blocks, single grid point):
      x_ref              : (T*Bp, F)   bf16  time-major; rows t*Bp..t*Bp+Bp-1
                                             hold timestep t (batch rows zero-
                                             padded to Bp=8 sublanes)
      per layer l        : wih_ref (in_l, 4H) bf16   gate order i, f, g, o
                           whh_ref (H,    4H) bf16
                           b_ref   (1,    4H) f32    (= b_ih + b_hh)
      gamma_ref/beta_ref : (1, H)  f32
      wcls_ref           : (H, Op) bf16   (Op = n_outputs padded to 128 lanes)
      bcls_ref           : (1, Op) f32
      out_ref            : (Bp, Op) f32   lane-dense store
      gx_ref (scratch)   : (T*Bp, 4H) f32  hoisted layer-0 input projection
    """
    G = 4 * H

    def kernel(*refs):
        x_ref = refs[0]
        layer_refs = refs[1:1 + 3 * num_layers]
        (gamma_ref, beta_ref, wcls_ref, bcls_ref, out_ref, gx_ref) = \
            refs[1 + 3 * num_layers:]

        # ---- hoisted: layer-0 input projection over the whole sequence ----
        # One big MXU matmul, off the serial critical path; bias folded in.
        wih0_ref = layer_refs[0]
        b0_ref = layer_refs[2]
        gx_ref[...] = (
            jnp.dot(x_ref[...], wih0_ref[...],
                    preferred_element_type=jnp.float32) + b0_ref[...])

        # Recurrent / per-layer input weights loaded once (small bf16 tiles).
        whh = [layer_refs[3 * l + 1][...] for l in range(num_layers)]
        wih = [None] + [layer_refs[3 * l][...] for l in range(1, num_layers)]
        # Hoist bias broadcasts out of the unrolled loop (JAX does not CSE
        # broadcast_in_dim).
        bias = [None] + [jnp.broadcast_to(layer_refs[3 * l + 2][...], (Bp, G))
                         for l in range(1, num_layers)]

        h_bf = [jnp.zeros((Bp, H), jnp.bfloat16) for _ in range(num_layers)]
        c = [jnp.zeros((Bp, H), jnp.float32) for _ in range(num_layers)]
        h_top = jnp.zeros((Bp, H), jnp.float32)

        def cell(gates, c_prev):
            # Static 64-lane slices of the 256-lane gate vector (i, f, g, o).
            i = jax.nn.sigmoid(gates[:, 0 * H:1 * H])
            f = jax.nn.sigmoid(gates[:, 1 * H:2 * H])
            g = jnp.tanh(gates[:, 2 * H:3 * H])
            o = jax.nn.sigmoid(gates[:, 3 * H:4 * H])
            c_new = f * c_prev + i * g
            h_new = o * jnp.tanh(c_new)
            return h_new, c_new

        # Fully unrolled time loop.  Layer l at step t depends only on layer
        # l-1 at step t and layer l at step t-1, so the scheduler can overlap
        # the layers' recurrences with a one-step skew (no inter-layer
        # barrier, no concatenate).
        for t in range(T):
            for l in range(num_layers):
                if l == 0:
                    # (8,128)-tile-aligned slice of the hoisted projection.
                    gates = (gx_ref[t * Bp:(t + 1) * Bp, :]
                             + jnp.dot(h_bf[0], whh[0],
                                       preferred_element_type=jnp.float32))
                else:
                    # Input projection folded into the per-step matmuls on the
                    # bf16 hidden state of the layer below.
                    gates = (bias[l]
                             + jnp.dot(h_bf[l - 1], wih[l],
                                       preferred_element_type=jnp.float32)
                             + jnp.dot(h_bf[l], whh[l],
                                       preferred_element_type=jnp.float32))
                h_f, c_new = cell(gates, c[l])
                c[l] = c_new
                h_bf[l] = h_f.astype(jnp.bfloat16)   # MXU operand for step t+1
                if l == num_layers - 1:
                    h_top = h_f                      # f32 copy for the head

        # ---- head: LayerNorm over the (unpadded) H lanes, then classifier ----
        mean = jnp.mean(h_top, axis=-1, keepdims=True)
        diff = h_top - mean
        var = jnp.mean(diff * diff, axis=-1, keepdims=True)
        normed = diff * lax.rsqrt(var + 1e-5) * gamma_ref[...] + beta_ref[...]
        # TODO(synk): inter-layer dropout (p=0.3) and final_dropout are
        # identity in eval/inference mode; no training path in this kernel.
        out_ref[...] = (
            jnp.dot(normed.astype(jnp.bfloat16), wcls_ref[...],
                    preferred_element_type=jnp.float32) + bcls_ref[...])

    return kernel


# ------------------------------ JAX wrappers ---------------------------------

def lstm_forward(params, x_btf):
    """Equivalent of LSTM.forward(X) (eval mode) for X of shape (B, T, F)."""
    B, T, F = x_btf.shape
    H, Op, n_out = params["H"], params["Op"], params["n_outputs"]
    num_layers = len(params["layers"])
    Bp = max(8, ((B + 7) // 8) * 8)   # sublane-pad each timestep to 8 rows

    # Time-major; each timestep padded to Bp rows so per-step slices of the
    # hoisted input projection are (8,128)-tile aligned inside the kernel.
    x_tm = jnp.transpose(x_btf, (1, 0, 2))                       # (T, B, F)
    x_pad = jnp.zeros((T, Bp, F), x_btf.dtype).at[:, :B, :].set(x_tm)
    x2d = x_pad.reshape(T * Bp, F).astype(jnp.bfloat16)

    args = [x2d]
    for (wih, whh, b) in params["layers"]:
        args += [wih, whh, b]
    args += [params["gamma"], params["beta"], params["wcls"], params["bcls"]]

    vmem = pl.BlockSpec(memory_space=pltpu.MemorySpace.VMEM)
    out_pad = pl.pallas_call(
        make_fused_lstm_kernel(T, Bp, H, num_layers),
        out_shape=jax.ShapeDtypeStruct((Bp, Op), jnp.float32),
        in_specs=[vmem] * len(args),
        out_specs=vmem,
        scratch_shapes=[pltpu.VMEM((T * Bp, 4 * H), jnp.float32)],
    )(*args)
    return out_pad[:B, :n_out]


def init_params(key, n_features=18, hidden_dim=64, n_outputs=15, num_layers=2):
    """PyTorch-default-style init, packed for the kernel (+ raw f32 copies for
    the pure-JAX reference)."""
    H = hidden_dim
    Op = ((n_outputs + 127) // 128) * 128          # lane-dense classifier out
    bound = 1.0 / (H ** 0.5)

    k = key
    layers, layers_raw = [], []
    in_size = n_features
    for _ in range(num_layers):
        k, k1, k2, k3, k4 = jax.random.split(k, 5)
        w_ih = jax.random.uniform(k1, (4 * H, in_size), jnp.float32, -bound, bound)
        w_hh = jax.random.uniform(k2, (4 * H, H), jnp.float32, -bound, bound)
        b_ih = jax.random.uniform(k3, (4 * H,), jnp.float32, -bound, bound)
        b_hh = jax.random.uniform(k4, (4 * H,), jnp.float32, -bound, bound)
        layers_raw.append((w_ih, w_hh, b_ih, b_hh))
        layers.append((w_ih.T.astype(jnp.bfloat16),             # (in, 4H)
                       w_hh.T.astype(jnp.bfloat16),              # (H, 4H)
                       (b_ih + b_hh).reshape(1, 4 * H)))          # f32
        in_size = H

    k, k1, k2 = jax.random.split(k, 3)
    w_cls = jax.random.uniform(k1, (n_outputs, H), jnp.float32, -bound, bound)
    b_cls = jax.random.uniform(k2, (n_outputs,), jnp.float32, -bound, bound)

    wcls = jnp.zeros((H, Op), jnp.float32).at[:, :n_outputs].set(w_cls.T)
    bcls = jnp.zeros((1, Op), jnp.float32).at[0, :n_outputs].set(b_cls)

    return {
        "layers": layers, "layers_raw": layers_raw,
        "gamma": jnp.ones((1, H), jnp.float32),
        "beta": jnp.zeros((1, H), jnp.float32),
        "wcls": wcls.astype(jnp.bfloat16), "bcls": bcls,
        "wcls_raw": w_cls, "bcls_raw": b_cls,
        "H": H, "Op": Op, "n_outputs": n_outputs,
    }


def lstm_reference(params, x_btf):
    """Pure-JAX f32 reference matching the PyTorch module in eval mode."""
    B, T, _ = x_btf.shape
    H = params["H"]
    seq = x_btf.astype(jnp.float32)
    for (w_ih, w_hh, b_ih, b_hh) in params["layers_raw"]:
        h = jnp.zeros((B, H), jnp.float32)
        c = jnp.zeros((B, H), jnp.float32)
        outs = []
        for t in range(T):
            gates = seq[:, t, :] @ w_ih.T + b_ih + h @ w_hh.T + b_hh
            i = jax.nn.sigmoid(gates[:, 0 * H:1 * H])
            f = jax.nn.sigmoid(gates[:, 1 * H:2 * H])
            g = jnp.tanh(gates[:, 2 * H:3 * H])
            o = jax.nn.sigmoid(gates[:, 3 * H:4 * H])
            c = f * c + i * g
            h = o * jnp.tanh(c)
            outs.append(h)
        seq = jnp.stack(outs, axis=1)
    last = seq[:, -1, :]
    mean = last.mean(-1, keepdims=True)
    var = ((last - mean) ** 2).mean(-1, keepdims=True)
    normed = (last - mean) / jnp.sqrt(var + 1e-5)
    normed = normed * params["gamma"][0] + params["beta"][0]
    return normed @ params["wcls_raw"].T + params["bcls_raw"]


if __name__ == "__main__":
    B, T = 2, 8
    N_FEATURES, HIDDEN, N_OUT, N_LAYERS = 18, 64, 15, 2

    key = jax.random.PRNGKey(0)
    kx, kp = jax.random.split(key)
    x = jax.random.normal(kx, (B, T, N_FEATURES), jnp.float32)
    params = init_params(kp, N_FEATURES, HIDDEN, N_OUT, N_LAYERS)

    out = jax.block_until_ready(lstm_forward(params, x))
    assert out.shape == (B, N_OUT), out.shape
    assert bool(jnp.all(jnp.isfinite(out)))

    # Loose-tolerance check vs. the pure-JAX f32 reference (kernel feeds the
    # MXU bf16 operands, so ~1e-2-level absolute deviation is expected).
    ref = jax.block_until_ready(lstm_reference(params, x))
    err = float(jnp.max(jnp.abs(out - ref)))
    assert err < 0.1, f"max abs error vs f32 reference too large: {err}"

    print("KERNEL_OK")
</pallas_src>

<mosaic_0001>
module attributes {stable_mosaic.version = 11 : i64} {
  func.func @kernel(%arg0: memref<64x18xbf16, #tpu.memory_space<vmem>>, %arg1: memref<18x256xbf16, #tpu.memory_space<vmem>>, %arg2: memref<64x256xbf16, #tpu.memory_space<vmem>>, %arg3: memref<1x256xf32, #tpu.memory_space<vmem>>, %arg4: memref<64x256xbf16, #tpu.memory_space<vmem>>, %arg5: memref<64x256xbf16, #tpu.memory_space<vmem>>, %arg6: memref<1x256xf32, #tpu.memory_space<vmem>>, %arg7: memref<1x64xf32, #tpu.memory_space<vmem>>, %arg8: memref<1x64xf32, #tpu.memory_space<vmem>>, %arg9: memref<64x128xbf16, #tpu.memory_space<vmem>>, %arg10: memref<1x128xf32, #tpu.memory_space<vmem>>, %arg11: memref<8x128xf32, #tpu.memory_space<vmem>>, %arg12: memref<64x256xf32, #tpu.memory_space<vmem>>) attributes {dimension_semantics = [], scalar_prefetch = 0 : i64, scratch_operands = 1 : i64, tpu.core_type = #tpu.core_type<tc>} {
    %c0 = arith.constant 0 : index
    %c0_0 = arith.constant 0 : index
    %0 = vector.load %arg0[%c0, %c0_0] : memref<64x18xbf16, #tpu.memory_space<vmem>>, vector<64x18xbf16>
    %c0_1 = arith.constant 0 : index
    %c0_2 = arith.constant 0 : index
    %1 = vector.load %arg1[%c0_1, %c0_2] : memref<18x256xbf16, #tpu.memory_space<vmem>>, vector<18x256xbf16>
    %cst = arith.constant dense<0.000000e+00> : vector<64x256xf32>
    %2 = tpu.matmul %0, %1, %cst {dimension_numbers = #tpu.dot_dimension_numbers<[1], [0], [0], [1], [0, 0, 1, 1], [], []>} : vector<64x18xbf16>, vector<18x256xbf16>, vector<64x256xf32> -> vector<64x256xf32>
    %c0_3 = arith.constant 0 : index
    %c0_4 = arith.constant 0 : index
    %3 = vector.load %arg3[%c0_3, %c0_4] : memref<1x256xf32, #tpu.memory_space<vmem>>, vector<1x256xf32>
    %4 = vector.broadcast %3 : vector<1x256xf32> to vector<64x256xf32>
    %5 = arith.addf %2, %4 : vector<64x256xf32>
    %c0_5 = arith.constant 0 : index
    %c0_6 = arith.constant 0 : index
    %6 = vector.load %arg12[%c0_5, %c0_6] : memref<64x256xf32, #tpu.memory_space<vmem>>, vector<64x256xf32>
    tpu.vector_store %arg12[%c0_5, %c0_6], %5 {strides = array<i32>} : memref<64x256xf32, #tpu.memory_space<vmem>>, vector<64x256xf32>,
    %c0_7 = arith.constant 0 : index
    %c0_8 = arith.constant 0 : index
    %7 = vector.load %arg2[%c0_7, %c0_8] : memref<64x256xbf16, #tpu.memory_space<vmem>>, vector<64x256xbf16>
    %c0_9 = arith.constant 0 : index
    %c0_10 = arith.constant 0 : index
    %8 = vector.load %arg5[%c0_9, %c0_10] : memref<64x256xbf16, #tpu.memory_space<vmem>>, vector<64x256xbf16>
    %c0_11 = arith.constant 0 : index
    %c0_12 = arith.constant 0 : index
    %9 = vector.load %arg4[%c0_11, %c0_12] : memref<64x256xbf16, #tpu.memory_space<vmem>>, vector<64x256xbf16>
    %c0_13 = arith.constant 0 : index
    %c0_14 = arith.constant 0 : index
    %10 = vector.load %arg6[%c0_13, %c0_14] : memref<1x256xf32, #tpu.memory_space<vmem>>, vector<1x256xf32>
    %11 = vector.shape_cast %10 : vector<1x256xf32> to vector<1x256xf32>
    %12 = vector.broadcast %11 : vector<1x256xf32> to vector<8x256xf32>
    %cst_15 = arith.constant 0.000000e+00 : bf16
    %13 = vector.broadcast %cst_15 : bf16 to vector<8x64xbf16>
    %cst_16 = arith.constant 0.000000e+00 : bf16
    %14 = vector.broadcast %cst_16 : bf16 to vector<8x64xbf16>
    %cst_17 = arith.constant 0.000000e+00 : f32
    %15 = vector.broadcast %cst_17 : f32 to vector<8x64xf32>
    %cst_18 = arith.constant 0.000000e+00 : f32
    %16 = vector.broadcast %cst_18 : f32 to vector<8x64xf32>
    %c0_19 = arith.constant 0 : index
    %c0_20 = arith.constant 0 : index
    %17 = vector.load %arg12[%c0_19, %c0_20] : memref<64x256xf32, #tpu.memory_space<vmem>>, vector<8x256xf32>
    %cst_21 = arith.constant dense<0.000000e+00> : vector<8x256xf32>
    %18 = tpu.matmul %13, %7, %cst_21 {dimension_numbers = #tpu.dot_dimension_numbers<[1], [0], [0], [1], [0, 0, 1, 1], [], []>} : vector<8x64xbf16>, vector<64x256xbf16>, vector<8x256xf32> -> vector<8x256xf32>
    %19 = arith.addf %17, %18 : vector<8x256xf32>
    %20 = vector.extract_strided_slice %19 {offsets = [0, 0], sizes = [8, 64], strides = [1, 1]} : vector<8x256xf32> to vector<8x64xf32>
    %21 = arith.negf %20 : vector<8x64xf32>
    %22 = math.exp %21 : vector<8x64xf32>
    %cst_22 = arith.constant 1.000000e+00 : f32
    %23 = vector.broadcast %cst_22 : f32 to vector<8x64xf32>
    %24 = arith.addf %23, %22 : vector<8x64xf32>
    %25 = arith.divf %23, %24 : vector<8x64xf32>
    %26 = vector.extract_strided_slice %19 {offsets = [0, 64], sizes = [8, 64], strides = [1, 1]} : vector<8x256xf32> to vector<8x64xf32>
    %27 = arith.negf %26 : vector<8x64xf32>
    %28 = math.exp %27 : vector<8x64xf32>
    %cst_23 = arith.constant 1.000000e+00 : f32
    %29 = vector.broadcast %cst_23 : f32 to vector<8x64xf32>
    %30 = arith.addf %29, %28 : vector<8x64xf32>
    %31 = arith.divf %29, %30 : vector<8x64xf32>
    %32 = vector.extract_strided_slice %19 {offsets = [0, 128], sizes = [8, 64], strides = [1, 1]} : vector<8x256xf32> to vector<8x64xf32>
    %33 = math.tanh %32 : vector<8x64xf32>
    %34 = vector.extract_strided_slice %19 {offsets = [0, 192], sizes = [8, 64], strides = [1, 1]} : vector<8x256xf32> to vector<8x64xf32>
    %35 = arith.negf %34 : vector<8x64xf32>
    %36 = math.exp %35 : vector<8x64xf32>
    %cst_24 = arith.constant 1.000000e+00 : f32
    %37 = vector.broadcast %cst_24 : f32 to vector<8x64xf32>
    %38 = arith.addf %37, %36 : vector<8x64xf32>
    %39 = arith.divf %37, %38 : vector<8x64xf32>
    %40 = arith.mulf %31, %15 : vector<8x64xf32>
    %41 = arith.mulf %25, %33 : vector<8x64xf32>
    %42 = arith.addf %40, %41 : vector<8x64xf32>
    %43 = math.tanh %42 : vector<8x64xf32>
    %44 = arith.mulf %39, %43 : vector<8x64xf32>
    %45 = arith.truncf %44 : vector<8x64xf32> to vector<8x64xbf16>
    %cst_25 = arith.constant dense<0.000000e+00> : vector<8x256xf32>
    %46 = tpu.matmul %45, %9, %cst_25 {dimension_numbers = #tpu.dot_dimension_numbers<[1], [0], [0], [1], [0, 0, 1, 1], [], []>} : vector<8x64xbf16>, vector<64x256xbf16>, vector<8x256xf32> -> vector<8x256xf32>
    %47 = arith.addf %12, %46 : vector<8x256xf32>
    %cst_26 = arith.constant dense<0.000000e+00> : vector<8x256xf32>
    %48 = tpu.matmul %14, %8, %cst_26 {dimension_numbers = #tpu.dot_dimension_numbers<[1], [0], [0], [1], [0, 0, 1, 1], [], []>} : vector<8x64xbf16>, vector<64x256xbf16>, vector<8x256xf32> -> vector<8x256xf32>
    %49 = arith.addf %47, %48 : vector<8x256xf32>
    %50 = vector.extract_strided_slice %49 {offsets = [0, 0], sizes = [8, 64], strides = [1, 1]} : vector<8x256xf32> to vector<8x64xf32>
    %51 = arith.negf %50 : vector<8x64xf32>
    %52 = math.exp %51 : vector<8x64xf32>
    %cst_27 = arith.constant 1.000000e+00 : f32
    %53 = vector.broadcast %cst_27 : f32 to vector<8x64xf32>
    %54 = arith.addf %53, %52 : vector<8x64xf32>
    %55 = arith.divf %53, %54 : vector<8x64xf32>
    %56 = vector.extract_strided_slice %49 {offsets = [0, 64], sizes = [8, 64], strides = [1, 1]} : vector<8x256xf32> to vector<8x64xf32>
    %57 = arith.negf %56 : vector<8x64xf32>
    %58 = math.exp %57 : vector<8x64xf32>
    %cst_28 = arith.constant 1.000000e+00 : f32
    %59 = vector.broadcast %cst_28 : f32 to vector<8x64xf32>
    %60 = arith.addf %59, %58 : vector<8x64xf32>
    %61 = arith.divf %59, %60 : vector<8x64xf32>
    %62 = vector.extract_strided_slice %49 {offsets = [0, 128], sizes = [8, 64], strides = [1, 1]} : vector<8x256xf32> to vector<8x64xf32>
    %63 = math.tanh %62 : vector<8x64xf32>
    %64 = vector.extract_strided_slice %49 {offsets = [0, 192], sizes = [8, 64], strides = [1, 1]} : vector<8x256xf32> to vector<8x64xf32>
    %65 = arith.negf %64 : vector<8x64xf32>
    %66 = math.exp %65 : vector<8x64xf32>
    %cst_29 = arith.constant 1.000000e+00 : f32
    %67 = vector.broadcast %cst_29 : f32 to vector<8x64xf32>
    %68 = arith.addf %67, %66 : vector<8x64xf32>
    %69 = arith.divf %67, %68 : vector<8x64xf32>
    %70 = arith.mulf %61, %16 : vector<8x64xf32>
    %71 = arith.mulf %55, %63 : vector<8x64xf32>
    %72 = arith.addf %70, %71 : vector<8x64xf32>
    %73 = math.tanh %72 : vector<8x64xf32>
    %74 = arith.mulf %69, %73 : vector<8x64xf32>
    %75 = arith.truncf %74 : vector<8x64xf32> to vector<8x64xbf16>
    %c8 = arith.constant 8 : index
    %c0_30 = arith.constant 0 : index
    %76 = vector.load %arg12[%c8, %c0_30] : memref<64x256xf32, #tpu.memory_space<vmem>>, vector<8x256xf32>
    %cst_31 = arith.constant dense<0.000000e+00> : vector<8x256xf32>
    %77 = tpu.matmul %45, %7, %cst_31 {dimension_numbers = #tpu.dot_dimension_numbers<[1], [0], [0], [1], [0, 0, 1, 1], [], []>} : vector<8x64xbf16>, vector<64x256xbf16>, vector<8x256xf32> -> vector<8x256xf32>
    %78 = arith.addf %76, %77 : vector<8x256xf32>
    %79 = vector.extract_strided_slice %78 {offsets = [0, 0], sizes = [8, 64], strides = [1, 1]} : vector<8x256xf32> to vector<8x64xf32>
    %80 = arith.negf %79 : vector<8x64xf32>
    %81 = math.exp %80 : vector<8x64xf32>
    %cst_32 = arith.constant 1.000000e+00 : f32
    %82 = vector.broadcast %cst_32 : f32 to vector<8x64xf32>
    %83 = arith.addf %82, %81 : vector<8x64xf32>
    %84 = arith.divf %82, %83 : vector<8x64xf32>
    %85 = vector.extract_strided_slice %78 {offsets = [0, 64], sizes = [8, 64], strides = [1, 1]} : vector<8x256xf32> to vector<8x64xf32>
    %86 = arith.negf %85 : vector<8x64xf32>
    %87 = math.exp %86 : vector<8x64xf32>
    %cst_33 = arith.constant 1.000000e+00 : f32
    %88 = vector.broadcast %cst_33 : f32 to vector<8x64xf32>
    %89 = arith.addf %88, %87 : vector<8x64xf32>
    %90 = arith.divf %88, %89 : vector<8x64xf32>
    %91 = vector.extract_strided_slice %78 {offsets = [0, 128], sizes = [8, 64], strides = [1, 1]} : vector<8x256xf32> to vector<8x64xf32>
    %92 = math.tanh %91 : vector<8x64xf32>
    %93 = vector.extract_strided_slice %78 {offsets = [0, 192], sizes = [8, 64], strides = [1, 1]} : vector<8x256xf32> to vector<8x64xf32>
    %94 = arith.negf %93 : vector<8x64xf32>
    %95 = math.exp %94 : vector<8x64xf32>
    %cst_34 = arith.constant 1.000000e+00 : f32
    %96 = vector.broadcast %cst_34 : f32 to vector<8x64xf32>
    %97 = arith.addf %96, %95 : vector<8x64xf32>
    %98 = arith.divf %96, %97 : vector<8x64xf32>
    %99 = arith.mulf %90, %42 : vector<8x64xf32>
    %100 = arith.mulf %84, %92 : vector<8x64xf32>
    %101 = arith.addf %99, %100 : vector<8x64xf32>
    %102 = math.tanh %101 : vector<8x64xf32>
    %103 = arith.mulf %98, %102 : vector<8x64xf32>
    %104 = arith.truncf %103 : vector<8x64xf32> to vector<8x64xbf16>
    %cst_35 = arith.constant dense<0.000000e+00> : vector<8x256xf32>
    %105 = tpu.matmul %104, %9, %cst_35 {dimension_numbers = #tpu.dot_dimension_numbers<[1], [0], [0], [1], [0, 0, 1, 1], [], []>} : vector<8x64xbf16>, vector<64x256xbf16>, vector<8x256xf32> -> vector<8x256xf32>
    %106 = arith.addf %12, %105 : vector<8x256xf32>
    %cst_36 = arith.constant dense<0.000000e+00> : vector<8x256xf32>
    %107 = tpu.matmul %75, %8, %cst_36 {dimension_numbers = #tpu.dot_dimension_numbers<[1], [0], [0], [1], [0, 0, 1, 1], [], []>} : vector<8x64xbf16>, vector<64x256xbf16>, vector<8x256xf32> -> vector<8x256xf32>
    %108 = arith.addf %106, %107 : vector<8x256xf32>
    %109 = vector.extract_strided_slice %108 {offsets = [0, 0], sizes = [8, 64], strides = [1, 1]} : vector<8x256xf32> to vector<8x64xf32>
    %110 = arith.negf %109 : vector<8x64xf32>
    %111 = math.exp %110 : vector<8x64xf32>
    %cst_37 = arith.constant 1.000000e+00 : f32
    %112 = vector.broadcast %cst_37 : f32 to vector<8x64xf32>
    %113 = arith.addf %112, %111 : vector<8x64xf32>
    %114 = arith.divf %112, %113 : vector<8x64xf32>
    %115 = vector.extract_strided_slice %108 {offsets = [0, 64], sizes = [8, 64], strides = [1, 1]} : vector<8x256xf32> to vector<8x64xf32>
    %116 = arith.negf %115 : vector<8x64xf32>
    %117 = math.exp %116 : vector<8x64xf32>
    %cst_38 = arith.constant 1.000000e+00 : f32
    %118 = vector.broadcast %cst_38 : f32 to vector<8x64xf32>
    %119 = arith.addf %118, %117 : vector<8x64xf32>
    %120 = arith.divf %118, %119 : vector<8x64xf32>
    %121 = vector.extract_strided_slice %108 {offsets = [0, 128], sizes = [8, 64], strides = [1, 1]} : vector<8x256xf32> to vector<8x64xf32>
    %122 = math.tanh %121 : vector<8x64xf32>
    %123 = vector.extract_strided_slice %108 {offsets = [0, 192], sizes = [8, 64], strides = [1, 1]} : vector<8x256xf32> to vector<8x64xf32>
    %124 = arith.negf %123 : vector<8x64xf32>
    %125 = math.exp %124 : vector<8x64xf32>
    %cst_39 = arith.constant 1.000000e+00 : f32
    %126 = vector.broadcast %cst_39 : f32 to vector<8x64xf32>
    %127 = arith.addf %126, %125 : vector<8x64xf32>
    %128 = arith.divf %126, %127 : vector<8x64xf32>
    %129 = arith.mulf %120, %72 : vector<8x64xf32>
    %130 = arith.mulf %114, %122 : vector<8x64xf32>
    %131 = arith.addf %129, %130 : vector<8x64xf32>
    %132 = math.tanh %131 : vector<8x64xf32>
    %133 = arith.mulf %128, %132 : vector<8x64xf32>
    %134 = arith.truncf %133 : vector<8x64xf32> to vector<8x64xbf16>
    %c16 = arith.constant 16 : index
    %c0_40 = arith.constant 0 : index
    %135 = vector.load %arg12[%c16, %c0_40] : memref<64x256xf32, #tpu.memory_space<vmem>>, vector<8x256xf32>
    %cst_41 = arith.constant dense<0.000000e+00> : vector<8x256xf32>
    %136 = tpu.matmul %104, %7, %cst_41 {dimension_numbers = #tpu.dot_dimension_numbers<[1], [0], [0], [1], [0, 0, 1, 1], [], []>} : vector<8x64xbf16>, vector<64x256xbf16>, vector<8x256xf32> -> vector<8x256xf32>
    %137 = arith.addf %135, %136 : vector<8x256xf32>
    %138 = vector.extract_strided_slice %137 {offsets = [0, 0], sizes = [8, 64], strides = [1, 1]} : vector<8x256xf32> to vector<8x64xf32>
    %139 = arith.negf %138 : vector<8x64xf32>
    %140 = math.exp %139 : vector<8x64xf32>
    %cst_42 = arith.constant 1.000000e+00 : f32
    %141 = vector.broadcast %cst_42 : f32 to vector<8x64xf32>
    %142 = arith.addf %141, %140 : vector<8x64xf32>
    %143 = arith.divf %141, %142 : vector<8x64xf32>
    %144 = vector.extract_strided_slice %137 {offsets = [0, 64], sizes = [8, 64], strides = [1, 1]} : vector<8x256xf32> to vector<8x64xf32>
    %145 = arith.negf %144 : vector<8x64xf32>
    %146 = math.exp %145 : vector<8x64xf32>
    %cst_43 = arith.constant 1.000000e+00 : f32
    %147 = vector.broadcast %cst_43 : f32 to vector<8x64xf32>
    %148 = arith.addf %147, %146 : vector<8x64xf32>
    %149 = arith.divf %147, %148 : vector<8x64xf32>
    %150 = vector.extract_strided_slice %137 {offsets = [0, 128], sizes = [8, 64], strides = [1, 1]} : vector<8x256xf32> to vector<8x64xf32>
    %151 = math.tanh %150 : vector<8x64xf32>
    %152 = vector.extract_strided_slice %137 {offsets = [0, 192], sizes = [8, 64], strides = [1, 1]} : vector<8x256xf32> to vector<8x64xf32>
    %153 = arith.negf %152 : vector<8x64xf32>
    %154 = math.exp %153 : vector<8x64xf32>
    %cst_44 = arith.constant 1.000000e+00 : f32
    %155 = vector.broadcast %cst_44 : f32 to vector<8x64xf32>
    %156 = arith.addf %155, %154 : vector<8x64xf32>
    %157 = arith.divf %155, %156 : vector<8x64xf32>
    %158 = arith.mulf %149, %101 : vector<8x64xf32>
    %159 = arith.mulf %143, %151 : vector<8x64xf32>
    %160 = arith.addf %158, %159 : vector<8x64xf32>
    %161 = math.tanh %160 : vector<8x64xf32>
    %162 = arith.mulf %157, %161 : vector<8x64xf32>
    %163 = arith.truncf %162 : vector<8x64xf32> to vector<8x64xbf16>
    %cst_45 = arith.constant dense<0.000000e+00> : vector<8x256xf32>
    %164 = tpu.matmul %163, %9, %cst_45 {dimension_numbers = #tpu.dot_dimension_numbers<[1], [0], [0], [1], [0, 0, 1, 1], [], []>} : vector<8x64xbf16>, vector<64x256xbf16>, vector<8x256xf32> -> vector<8x256xf32>
    %165 = arith.addf %12, %164 : vector<8x256xf32>
    %cst_46 = arith.constant dense<0.000000e+00> : vector<8x256xf32>
    %166 = tpu.matmul %134, %8, %cst_46 {dimension_numbers = #tpu.dot_dimension_numbers<[1], [0], [0], [1], [0, 0, 1, 1], [], []>} : vector<8x64xbf16>, vector<64x256xbf16>, vector<8x256xf32> -> vector<8x256xf32>
    %167 = arith.addf %165, %166 : vector<8x256xf32>
    %168 = vector.extract_strided_slice %167 {offsets = [0, 0], sizes = [8, 64], strides = [1, 1]} : vector<8x256xf32> to vector<8x64xf32>
    %169 = arith.negf %168 : vector<8x64xf32>
    %170 = math.exp %169 : vector<8x64xf32>
    %cst_47 = arith.constant 1.000000e+00 : f32
    %171 = vector.broadcast %cst_47 : f32 to vector<8x64xf32>
    %172 = arith.addf %171, %170 : vector<8x64xf32>
    %173 = arith.divf %171, %172 : vector<8x64xf32>
    %174 = vector.extract_strided_slice %167 {offsets = [0, 64], sizes = [8, 64], strides = [1, 1]} : vector<8x256xf32> to vector<8x64xf32>
    %175 = arith.negf %174 : vector<8x64xf32>
    %176 = math.exp %175 : vector<8x64xf32>
    %cst_48 = arith.constant 1.000000e+00 : f32
    %177 = vector.broadcast %cst_48 : f32 to vector<8x64xf32>
    %178 = arith.addf %177, %176 : vector<8x64xf32>
    %179 = arith.divf %177, %178 : vector<8x64xf32>
    %180 = vector.extract_strided_slice %167 {offsets = [0, 128], sizes = [8, 64], strides = [1, 1]} : vector<8x256xf32> to vector<8x64xf32>
    %181 = math.tanh %180 : vector<8x64xf32>
    %182 = vector.extract_strided_slice %167 {offsets = [0, 192], sizes = [8, 64], strides = [1, 1]} : vector<8x256xf32> to vector<8x64xf32>
    %183 = arith.negf %182 : vector<8x64xf32>
    %184 = math.exp %183 : vector<8x64xf32>
    %cst_49 = arith.constant 1.000000e+00 : f32
    %185 = vector.broadcast %cst_49 : f32 to vector<8x64xf32>
    %186 = arith.addf %185, %184 : vector<8x64xf32>
    %187 = arith.divf %185, %186 : vector<8x64xf32>
    %188 = arith.mulf %179, %131 : vector<8x64xf32>
    %189 = arith.mulf %173, %181 : vector<8x64xf32>
    %190 = arith.addf %188, %189 : vector<8x64xf32>
    %191 = math.tanh %190 : vector<8x64xf32>
    %192 = arith.mulf %187, %191 : vector<8x64xf32>
    %193 = arith.truncf %192 : vector<8x64xf32> to vector<8x64xbf16>
    %c24 = arith.constant 24 : index
    %c0_50 = arith.constant 0 : index
    %194 = vector.load %arg12[%c24, %c0_50] : memref<64x256xf32, #tpu.memory_space<vmem>>, vector<8x256xf32>
    %cst_51 = arith.constant dense<0.000000e+00> : vector<8x256xf32>
    %195 = tpu.matmul %163, %7, %cst_51 {dimension_numbers = #tpu.dot_dimension_numbers<[1], [0], [0], [1], [0, 0, 1, 1], [], []>} : vector<8x64xbf16>, vector<64x256xbf16>, vector<8x256xf32> -> vector<8x256xf32>
    %196 = arith.addf %194, %195 : vector<8x256xf32>
    %197 = vector.extract_strided_slice %196 {offsets = [0, 0], sizes = [8, 64], strides = [1, 1]} : vector<8x256xf32> to vector<8x64xf32>
    %198 = arith.negf %197 : vector<8x64xf32>
    %199 = math.exp %198 : vector<8x64xf32>
    %cst_52 = arith.constant 1.000000e+00 : f32
    %200 = vector.broadcast %cst_52 : f32 to vector<8x64xf32>
    %201 = arith.addf %200, %199 : vector<8x64xf32>
    %202 = arith.divf %200, %201 : vector<8x64xf32>
    %203 = vector.extract_strided_slice %196 {offsets = [0, 64], sizes = [8, 64], strides = [1, 1]} : vector<8x256xf32> to vector<8x64xf32>
    %204 = arith.negf %203 : vector<8x64xf32>
    %205 = math.exp %204 : vector<8x64xf32>
    %cst_53 = arith.constant 1.000000e+00 : f32
    %206 = vector.broadcast %cst_53 : f32 to vector<8x64xf32>
    %207 = arith.addf %206, %205 : vector<8x64xf32>
    %208 = arith.divf %206, %207 : vector<8x64xf32>
    %209 = vector.extract_strided_slice %196 {offsets = [0, 128], sizes = [8, 64], strides = [1, 1]} : vector<8x256xf32> to vector<8x64xf32>
    %210 = math.tanh %209 : vector<8x64xf32>
    %211 = vector.extract_strided_slice %196 {offsets = [0, 192], sizes = [8, 64], strides = [1, 1]} : vector<8x256xf32> to vector<8x64xf32>
    %212 = arith.negf %211 : vector<8x64xf32>
    %213 = math.exp %212 : vector<8x64xf32>
    %cst_54 = arith.constant 1.000000e+00 : f32
    %214 = vector.broadcast %cst_54 : f32 to vector<8x64xf32>
    %215 = arith.addf %214, %213 : vector<8x64xf32>
    %216 = arith.divf %214, %215 : vector<8x64xf32>
    %217 = arith.mulf %208, %160 : vector<8x64xf32>
    %218 = arith.mulf %202, %210 : vector<8x64xf32>
    %219 = arith.addf %217, %218 : vector<8x64xf32>
    %220 = math.tanh %219 : vector<8x64xf32>
    %221 = arith.mulf %216, %220 : vector<8x64xf32>
    %222 = arith.truncf %221 : vector<8x64xf32> to vector<8x64xbf16>
    %cst_55 = arith.constant dense<0.000000e+00> : vector<8x256xf32>
    %223 = tpu.matmul %222, %9, %cst_55 {dimension_numbers = #tpu.dot_dimension_numbers<[1], [0], [0], [1], [0, 0, 1, 1], [], []>} : vector<8x64xbf16>, vector<64x256xbf16>, vector<8x256xf32> -> vector<8x256xf32>
    %224 = arith.addf %12, %223 : vector<8x256xf32>
    %cst_56 = arith.constant dense<0.000000e+00> : vector<8x256xf32>
    %225 = tpu.matmul %193, %8, %cst_56 {dimension_numbers = #tpu.dot_dimension_numbers<[1], [0], [0], [1], [0, 0, 1, 1], [], []>} : vector<8x64xbf16>, vector<64x256xbf16>, vector<8x256xf32> -> vector<8x256xf32>
    %226 = arith.addf %224, %225 : vector<8x256xf32>
    %227 = vector.extract_strided_slice %226 {offsets = [0, 0], sizes = [8, 64], strides = [1, 1]} : vector<8x256xf32> to vector<8x64xf32>
    %228 = arith.negf %227 : vector<8x64xf32>
    %229 = math.exp %228 : vector<8x64xf32>
    %cst_57 = arith.constant 1.000000e+00 : f32
    %230 = vector.broadcast %cst_57 : f32 to vector<8x64xf32>
    %231 = arith.addf %230, %229 : vector<8x64xf32>
    %232 = arith.divf %230, %231 : vector<8x64xf32>
    %233 = vector.extract_strided_slice %226 {offsets = [0, 64], sizes = [8, 64], strides = [1, 1]} : vector<8x256xf32> to vector<8x64xf32>
    %234 = arith.negf %233 : vector<8x64xf32>
    %235 = math.exp %234 : vector<8x64xf32>
    %cst_58 = arith.constant 1.000000e+00 : f32
    %236 = vector.broadcast %cst_58 : f32 to vector<8x64xf32>
    %237 = arith.addf %236, %235 : vector<8x64xf32>
    %238 = arith.divf %236, %237 : vector<8x64xf32>
    %239 = vector.extract_strided_slice %226 {offsets = [0, 128], sizes = [8, 64], strides = [1, 1]} : vector<8x256xf32> to vector<8x64xf32>
    %240 = math.tanh %239 : vector<8x64xf32>
    %241 = vector.extract_strided_slice %226 {offsets = [0, 192], sizes = [8, 64], strides = [1, 1]} : vector<8x256xf32> to vector<8x64xf32>
    %242 = arith.negf %241 : vector<8x64xf32>
    %243 = math.exp %242 : vector<8x64xf32>
    %cst_59 = arith.constant 1.000000e+00 : f32
    %244 = vector.broadcast %cst_59 : f32 to vector<8x64xf32>
    %245 = arith.addf %244, %243 : vector<8x64xf32>
    %246 = arith.divf %244, %245 : vector<8x64xf32>
    %247 = arith.mulf %238, %190 : vector<8x64xf32>
    %248 = arith.mulf %232, %240 : vector<8x64xf32>
    %249 = arith.addf %247, %248 : vector<8x64xf32>
    %250 = math.tanh %249 : vector<8x64xf32>
    %251 = arith.mulf %246, %250 : vector<8x64xf32>
    %252 = arith.truncf %251 : vector<8x64xf32> to vector<8x64xbf16>
    %c32 = arith.constant 32 : index
    %c0_60 = arith.constant 0 : index
    %253 = vector.load %arg12[%c32, %c0_60] : memref<64x256xf32, #tpu.memory_space<vmem>>, vector<8x256xf32>
    %cst_61 = arith.constant dense<0.000000e+00> : vector<8x256xf32>
    %254 = tpu.matmul %222, %7, %cst_61 {dimension_numbers = #tpu.dot_dimension_numbers<[1], [0], [0], [1], [0, 0, 1, 1], [], []>} : vector<8x64xbf16>, vector<64x256xbf16>, vector<8x256xf32> -> vector<8x256xf32>
    %255 = arith.addf %253, %254 : vector<8x256xf32>
    %256 = vector.extract_strided_slice %255 {offsets = [0, 0], sizes = [8, 64], strides = [1, 1]} : vector<8x256xf32> to vector<8x64xf32>
    %257 = arith.negf %256 : vector<8x64xf32>
    %258 = math.exp %257 : vector<8x64xf32>
    %cst_62 = arith.constant 1.000000e+00 : f32
    %259 = vector.broadcast %cst_62 : f32 to vector<8x64xf32>
    %260 = arith.addf %259, %258 : vector<8x64xf32>
    %261 = arith.divf %259, %260 : vector<8x64xf32>
    %262 = vector.extract_strided_slice %255 {offsets = [0, 64], sizes = [8, 64], strides = [1, 1]} : vector<8x256xf32> to vector<8x64xf32>
    %263 = arith.negf %262 : vector<8x64xf32>
    %264 = math.exp %263 : vector<8x64xf32>
    %cst_63 = arith.constant 1.000000e+00 : f32
    %265 = vector.broadcast %cst_63 : f32 to vector<8x64xf32>
    %266 = arith.addf %265, %264 : vector<8x64xf32>
    %267 = arith.divf %265, %266 : vector<8x64xf32>
    %268 = vector.extract_strided_slice %255 {offsets = [0, 128], sizes = [8, 64], strides = [1, 1]} : vector<8x256xf32> to vector<8x64xf32>
    %269 = math.tanh %268 : vector<8x64xf32>
    %270 = vector.extract_strided_slice %255 {offsets = [0, 192], sizes = [8, 64], strides = [1, 1]} : vector<8x256xf32> to vector<8x64xf32>
    %271 = arith.negf %270 : vector<8x64xf32>
    %272 = math.exp %271 : vector<8x64xf32>
    %cst_64 = arith.constant 1.000000e+00 : f32
    %273 = vector.broadcast %cst_64 : f32 to vector<8x64xf32>
    %274 = arith.addf %273, %272 : vector<8x64xf32>
    %275 = arith.divf %273, %274 : vector<8x64xf32>
    %276 = arith.mulf %267, %219 : vector<8x64xf32>
    %277 = arith.mulf %261, %269 : vector<8x64xf32>
    %278 = arith.addf %276, %277 : vector<8x64xf32>
    %279 = math.tanh %278 : vector<8x64xf32>
    %280 = arith.mulf %275, %279 : vector<8x64xf32>
    %281 = arith.truncf %280 : vector<8x64xf32> to vector<8x64xbf16>
    %cst_65 = arith.constant dense<0.000000e+00> : vector<8x256xf32>
    %282 = tpu.matmul %281, %9, %cst_65 {dimension_numbers = #tpu.dot_dimension_numbers<[1], [0], [0], [1], [0, 0, 1, 1], [], []>} : vector<8x64xbf16>, vector<64x256xbf16>, vector<8x256xf32> -> vector<8x256xf32>
    %283 = arith.addf %12, %282 : vector<8x256xf32>
    %cst_66 = arith.constant dense<0.000000e+00> : vector<8x256xf32>
    %284 = tpu.matmul %252, %8, %cst_66 {dimension_numbers = #tpu.dot_dimension_numbers<[1], [0], [0], [1], [0, 0, 1, 1], [], []>} : vector<8x64xbf16>, vector<64x256xbf16>, vector<8x256xf32> -> vector<8x256xf32>
    %285 = arith.addf %283, %284 : vector<8x256xf32>
    %286 = vector.extract_strided_slice %285 {offsets = [0, 0], sizes = [8, 64], strides = [1, 1]} : vector<8x256xf32> to vector<8x64xf32>
    %287 = arith.negf %286 : vector<8x64xf32>
    %288 = math.exp %287 : vector<8x64xf32>
    %cst_67 = arith.constant 1.000000e+00 : f32
    %289 = vector.broadcast %cst_67 : f32 to vector<8x64xf32>
    %290 = arith.addf %289, %288 : vector<8x64xf32>
    %291 = arith.divf %289, %290 : vector<8x64xf32>
    %292 = vector.extract_strided_slice %285 {offsets = [0, 64], sizes = [8, 64], strides = [1, 1]} : vector<8x256xf32> to vector<8x64xf32>
    %293 = arith.negf %292 : vector<8x64xf32>
    %294 = math.exp %293 : vector<8x64xf32>
    %cst_68 = arith.constant 1.000000e+00 : f32
    %295 = vector.broadcast %cst_68 : f32 to vector<8x64xf32>
    %296 = arith.addf %295, %294 : vector<8x64xf32>
    %297 = arith.divf %295, %296 : vector<8x64xf32>
    %298 = vector.extract_strided_slice %285 {offsets = [0, 128], sizes = [8, 64], strides = [1, 1]} : vector<8x256xf32> to vector<8x64xf32>
    %299 = math.tanh %298 : vector<8x64xf32>
    %300 = vector.extract_strided_slice %285 {offsets = [0, 192], sizes = [8, 64], strides = [1, 1]} : vector<8x256xf32> to vector<8x64xf32>
    %301 = arith.negf %300 : vector<8x64xf32>
    %302 = math.exp %301 : vector<8x64xf32>
    %cst_69 = arith.constant 1.000000e+00 : f32
    %303 = vector.broadcast %cst_69 : f32 to vector<8x64xf32>
    %304 = arith.addf %303, %302 : vector<8x64xf32>
    %305 = arith.divf %303, %304 : vector<8x64xf32>
    %306 = arith.mulf %297, %249 : vector<8x64xf32>
    %307 = arith.mulf %291, %299 : vector<8x64xf32>
    %308 = arith.addf %306, %307 : vector<8x64xf32>
    %309 = math.tanh %308 : vector<8x64xf32>
    %310 = arith.mulf %305, %309 : vector<8x64xf32>
    %311 = arith.truncf %310 : vector<8x64xf32> to vector<8x64xbf16>
    %c40 = arith.constant 40 : index
    %c0_70 = arith.constant 0 : index
    %312 = vector.load %arg12[%c40, %c0_70] : memref<64x256xf32, #tpu.memory_space<vmem>>, vector<8x256xf32>
    %cst_71 = arith.constant dense<0.000000e+00> : vector<8x256xf32>
    %313 = tpu.matmul %281, %7, %cst_71 {dimension_numbers = #tpu.dot_dimension_numbers<[1], [0], [0], [1], [0, 0, 1, 1], [], []>} : vector<8x64xbf16>, vector<64x256xbf16>, vector<8x256xf32> -> vector<8x256xf32>
    %314 = arith.addf %312, %313 : vector<8x256xf32>
    %315 = vector.extract_strided_slice %314 {offsets = [0, 0], sizes = [8, 64], strides = [1, 1]} : vector<8x256xf32> to vector<8x64xf32>
    %316 = arith.negf %315 : vector<8x64xf32>
    %317 = math.exp %316 : vector<8x64xf32>
    %cst_72 = arith.constant 1.000000e+00 : f32
    %318 = vector.broadcast %cst_72 : f32 to vector<8x64xf32>
    %319 = arith.addf %318, %317 : vector<8x64xf32>
    %320 = arith.divf %318, %319 : vector<8x64xf32>
    %321 = vector.extract_strided_slice %314 {offsets = [0, 64], sizes = [8, 64], strides = [1, 1]} : vector<8x256xf32> to vector<8x64xf32>
    %322 = arith.negf %321 : vector<8x64xf32>
    %323 = math.exp %322 : vector<8x64xf32>
    %cst_73 = arith.constant 1.000000e+00 : f32
    %324 = vector.broadcast %cst_73 : f32 to vector<8x64xf32>
    %325 = arith.addf %324, %323 : vector<8x64xf32>
    %326 = arith.divf %324, %325 : vector<8x64xf32>
    %327 = vector.extract_strided_slice %314 {offsets = [0, 128], sizes = [8, 64], strides = [1, 1]} : vector<8x256xf32> to vector<8x64xf32>
    %328 = math.tanh %327 : vector<8x64xf32>
    %329 = vector.extract_strided_slice %314 {offsets = [0, 192], sizes = [8, 64], strides = [1, 1]} : vector<8x256xf32> to vector<8x64xf32>
    %330 = arith.negf %329 : vector<8x64xf32>
    %331 = math.exp %330 : vector<8x64xf32>
    %cst_74 = arith.constant 1.000000e+00 : f32
    %332 = vector.broadcast %cst_74 : f32 to vector<8x64xf32>
    %333 = arith.addf %332, %331 : vector<8x64xf32>
    %334 = arith.divf %332, %333 : vector<8x64xf32>
    %335 = arith.mulf %326, %278 : vector<8x64xf32>
    %336 = arith.mulf %320, %328 : vector<8x64xf32>
    %337 = arith.addf %335, %336 : vector<8x64xf32>
    %338 = math.tanh %337 : vector<8x64xf32>
    %339 = arith.mulf %334, %338 : vector<8x64xf32>
    %340 = arith.truncf %339 : vector<8x64xf32> to vector<8x64xbf16>
    %cst_75 = arith.constant dense<0.000000e+00> : vector<8x256xf32>
    %341 = tpu.matmul %340, %9, %cst_75 {dimension_numbers = #tpu.dot_dimension_numbers<[1], [0], [0], [1], [0, 0, 1, 1], [], []>} : vector<8x64xbf16>, vector<64x256xbf16>, vector<8x256xf32> -> vector<8x256xf32>
    %342 = arith.addf %12, %341 : vector<8x256xf32>
    %cst_76 = arith.constant dense<0.000000e+00> : vector<8x256xf32>
    %343 = tpu.matmul %311, %8, %cst_76 {dimension_numbers = #tpu.dot_dimension_numbers<[1], [0], [0], [1], [0, 0, 1, 1], [], []>} : vector<8x64xbf16>, vector<64x256xbf16>, vector<8x256xf32> -> vector<8x256xf32>
    %344 = arith.addf %342, %343 : vector<8x256xf32>
    %345 = vector.extract_strided_slice %344 {offsets = [0, 0], sizes = [8, 64], strides = [1, 1]} : vector<8x256xf32> to vector<8x64xf32>
    %346 = arith.negf %345 : vector<8x64xf32>
    %347 = math.exp %346 : vector<8x64xf32>
    %cst_77 = arith.constant 1.000000e+00 : f32
    %348 = vector.broadcast %cst_77 : f32 to vector<8x64xf32>
    %349 = arith.addf %348, %347 : vector<8x64xf32>
    %350 = arith.divf %348, %349 : vector<8x64xf32>
    %351 = vector.extract_strided_slice %344 {offsets = [0, 64], sizes = [8, 64], strides = [1, 1]} : vector<8x256xf32> to vector<8x64xf32>
    %352 = arith.negf %351 : vector<8x64xf32>
    %353 = math.exp %352 : vector<8x64xf32>
    %cst_78 = arith.constant 1.000000e+00 : f32
    %354 = vector.broadcast %cst_78 : f32 to vector<8x64xf32>
    %355 = arith.addf %354, %353 : vector<8x64xf32>
    %356 = arith.divf %354, %355 : vector<8x64xf32>
    %357 = vector.extract_strided_slice %344 {offsets = [0, 128], sizes = [8, 64], strides = [1, 1]} : vector<8x256xf32> to vector<8x64xf32>
    %358 = math.tanh %357 : vector<8x64xf32>
    %359 = vector.extract_strided_slice %344 {offsets = [0, 192], sizes = [8, 64], strides = [1, 1]} : vector<8x256xf32> to vector<8x64xf32>
    %360 = arith.negf %359 : vector<8x64xf32>
    %361 = math.exp %360 : vector<8x64xf32>
    %cst_79 = arith.constant 1.000000e+00 : f32
    %362 = vector.broadcast %cst_79 : f32 to vector<8x64xf32>
    %363 = arith.addf %362, %361 : vector<8x64xf32>
    %364 = arith.divf %362, %363 : vector<8x64xf32>
    %365 = arith.mulf %356, %308 : vector<8x64xf32>
    %366 = arith.mulf %350, %358 : vector<8x64xf32>
    %367 = arith.addf %365, %366 : vector<8x64xf32>
    %368 = math.tanh %367 : vector<8x64xf32>
    %369 = arith.mulf %364, %368 : vector<8x64xf32>
    %370 = arith.truncf %369 : vector<8x64xf32> to vector<8x64xbf16>
    %c48 = arith.constant 48 : index
    %c0_80 = arith.constant 0 : index
    %371 = vector.load %arg12[%c48, %c0_80] : memref<64x256xf32, #tpu.memory_space<vmem>>, vector<8x256xf32>
    %cst_81 = arith.constant dense<0.000000e+00> : vector<8x256xf32>
    %372 = tpu.matmul %340, %7, %cst_81 {dimension_numbers = #tpu.dot_dimension_numbers<[1], [0], [0], [1], [0, 0, 1, 1], [], []>} : vector<8x64xbf16>, vector<64x256xbf16>, vector<8x256xf32> -> vector<8x256xf32>
    %373 = arith.addf %371, %372 : vector<8x256xf32>
    %374 = vector.extract_strided_slice %373 {offsets = [0, 0], sizes = [8, 64], strides = [1, 1]} : vector<8x256xf32> to vector<8x64xf32>
    %375 = arith.negf %374 : vector<8x64xf32>
    %376 = math.exp %375 : vector<8x64xf32>
    %cst_82 = arith.constant 1.000000e+00 : f32
    %377 = vector.broadcast %cst_82 : f32 to vector<8x64xf32>
    %378 = arith.addf %377, %376 : vector<8x64xf32>
    %379 = arith.divf %377, %378 : vector<8x64xf32>
    %380 = vector.extract_strided_slice %373 {offsets = [0, 64], sizes = [8, 64], strides = [1, 1]} : vector<8x256xf32> to vector<8x64xf32>
    %381 = arith.negf %380 : vector<8x64xf32>
    %382 = math.exp %381 : vector<8x64xf32>
    %cst_83 = arith.constant 1.000000e+00 : f32
    %383 = vector.broadcast %cst_83 : f32 to vector<8x64xf32>
    %384 = arith.addf %383, %382 : vector<8x64xf32>
    %385 = arith.divf %383, %384 : vector<8x64xf32>
    %386 = vector.extract_strided_slice %373 {offsets = [0, 128], sizes = [8, 64], strides = [1, 1]} : vector<8x256xf32> to vector<8x64xf32>
    %387 = math.tanh %386 : vector<8x64xf32>
    %388 = vector.extract_strided_slice %373 {offsets = [0, 192], sizes = [8, 64], strides = [1, 1]} : vector<8x256xf32> to vector<8x64xf32>
    %389 = arith.negf %388 : vector<8x64xf32>
    %390 = math.exp %389 : vector<8x64xf32>
    %cst_84 = arith.constant 1.000000e+00 : f32
    %391 = vector.broadcast %cst_84 : f32 to vector<8x64xf32>
    %392 = arith.addf %391, %390 : vector<8x64xf32>
    %393 = arith.divf %391, %392 : vector<8x64xf32>
    %394 = arith.mulf %385, %337 : vector<8x64xf32>
    %395 = arith.mulf %379, %387 : vector<8x64xf32>
    %396 = arith.addf %394, %395 : vector<8x64xf32>
    %397 = math.tanh %396 : vector<8x64xf32>
    %398 = arith.mulf %393, %397 : vector<8x64xf32>
    %399 = arith.truncf %398 : vector<8x64xf32> to vector<8x64xbf16>
    %cst_85 = arith.constant dense<0.000000e+00> : vector<8x256xf32>
    %400 = tpu.matmul %399, %9, %cst_85 {dimension_numbers = #tpu.dot_dimension_numbers<[1], [0], [0], [1], [0, 0, 1, 1], [], []>} : vector<8x64xbf16>, vector<64x256xbf16>, vector<8x256xf32> -> vector<8x256xf32>
    %401 = arith.addf %12, %400 : vector<8x256xf32>
    %cst_86 = arith.constant dense<0.000000e+00> : vector<8x256xf32>
    %402 = tpu.matmul %370, %8, %cst_86 {dimension_numbers = #tpu.dot_dimension_numbers<[1], [0], [0], [1], [0, 0, 1, 1], [], []>} : vector<8x64xbf16>, vector<64x256xbf16>, vector<8x256xf32> -> vector<8x256xf32>
    %403 = arith.addf %401, %402 : vector<8x256xf32>
    %404 = vector.extract_strided_slice %403 {offsets = [0, 0], sizes = [8, 64], strides = [1, 1]} : vector<8x256xf32> to vector<8x64xf32>
    %405 = arith.negf %404 : vector<8x64xf32>
    %406 = math.exp %405 : vector<8x64xf32>
    %cst_87 = arith.constant 1.000000e+00 : f32
    %407 = vector.broadcast %cst_87 : f32 to vector<8x64xf32>
    %408 = arith.addf %407, %406 : vector<8x64xf32>
    %409 = arith.divf %407, %408 : vector<8x64xf32>
    %410 = vector.extract_strided_slice %403 {offsets = [0, 64], sizes = [8, 64], strides = [1, 1]} : vector<8x256xf32> to vector<8x64xf32>
    %411 = arith.negf %410 : vector<8x64xf32>
    %412 = math.exp %411 : vector<8x64xf32>
    %cst_88 = arith.constant 1.000000e+00 : f32
    %413 = vector.broadcast %cst_88 : f32 to vector<8x64xf32>
    %414 = arith.addf %413, %412 : vector<8x64xf32>
    %415 = arith.divf %413, %414 : vector<8x64xf32>
    %416 = vector.extract_strided_slice %403 {offsets = [0, 128], sizes = [8, 64], strides = [1, 1]} : vector<8x256xf32> to vector<8x64xf32>
    %417 = math.tanh %416 : vector<8x64xf32>
    %418 = vector.extract_strided_slice %403 {offsets = [0, 192], sizes = [8, 64], strides = [1, 1]} : vector<8x256xf32> to vector<8x64xf32>
    %419 = arith.negf %418 : vector<8x64xf32>
    %420 = math.exp %419 : vector<8x64xf32>
    %cst_89 = arith.constant 1.000000e+00 : f32
    %421 = vector.broadcast %cst_89 : f32 to vector<8x64xf32>
    %422 = arith.addf %421, %420 : vector<8x64xf32>
    %423 = arith.divf %421, %422 : vector<8x64xf32>
    %424 = arith.mulf %415, %367 : vector<8x64xf32>
    %425 = arith.mulf %409, %417 : vector<8x64xf32>
    %426 = arith.addf %424, %425 : vector<8x64xf32>
    %427 = math.tanh %426 : vector<8x64xf32>
    %428 = arith.mulf %423, %427 : vector<8x64xf32>
    %429 = arith.truncf %428 : vector<8x64xf32> to vector<8x64xbf16>
    %c56 = arith.constant 56 : index
    %c0_90 = arith.constant 0 : index
    %430 = vector.load %arg12[%c56, %c0_90] : memref<64x256xf32, #tpu.memory_space<vmem>>, vector<8x256xf32>
    %cst_91 = arith.constant dense<0.000000e+00> : vector<8x256xf32>
    %431 = tpu.matmul %399, %7, %cst_91 {dimension_numbers = #tpu.dot_dimension_numbers<[1], [0], [0], [1], [0, 0, 1, 1], [], []>} : vector<8x64xbf16>, vector<64x256xbf16>, vector<8x256xf32> -> vector<8x256xf32>
    %432 = arith.addf %430, %431 : vector<8x256xf32>
    %433 = vector.extract_strided_slice %432 {offsets = [0, 0], sizes = [8, 64], strides = [1, 1]} : vector<8x256xf32> to vector<8x64xf32>
    %434 = arith.negf %433 : vector<8x64xf32>
    %435 = math.exp %434 : vector<8x64xf32>
    %cst_92 = arith.constant 1.000000e+00 : f32
    %436 = vector.broadcast %cst_92 : f32 to vector<8x64xf32>
    %437 = arith.addf %436, %435 : vector<8x64xf32>
    %438 = arith.divf %436, %437 : vector<8x64xf32>
    %439 = vector.extract_strided_slice %432 {offsets = [0, 64], sizes = [8, 64], strides = [1, 1]} : vector<8x256xf32> to vector<8x64xf32>
    %440 = arith.negf %439 : vector<8x64xf32>
    %441 = math.exp %440 : vector<8x64xf32>
    %cst_93 = arith.constant 1.000000e+00 : f32
    %442 = vector.broadcast %cst_93 : f32 to vector<8x64xf32>
    %443 = arith.addf %442, %441 : vector<8x64xf32>
    %444 = arith.divf %442, %443 : vector<8x64xf32>
    %445 = vector.extract_strided_slice %432 {offsets = [0, 128], sizes = [8, 64], strides = [1, 1]} : vector<8x256xf32> to vector<8x64xf32>
    %446 = math.tanh %445 : vector<8x64xf32>
    %447 = vector.extract_strided_slice %432 {offsets = [0, 192], sizes = [8, 64], strides = [1, 1]} : vector<8x256xf32> to vector<8x64xf32>
    %448 = arith.negf %447 : vector<8x64xf32>
    %449 = math.exp %448 : vector<8x64xf32>
    %cst_94 = arith.constant 1.000000e+00 : f32
    %450 = vector.broadcast %cst_94 : f32 to vector<8x64xf32>
    %451 = arith.addf %450, %449 : vector<8x64xf32>
    %452 = arith.divf %450, %451 : vector<8x64xf32>
    %453 = arith.mulf %444, %396 : vector<8x64xf32>
    %454 = arith.mulf %438, %446 : vector<8x64xf32>
    %455 = arith.addf %453, %454 : vector<8x64xf32>
    %456 = math.tanh %455 : vector<8x64xf32>
    %457 = arith.mulf %452, %456 : vector<8x64xf32>
    %458 = arith.truncf %457 : vector<8x64xf32> to vector<8x64xbf16>
    %cst_95 = arith.constant dense<0.000000e+00> : vector<8x256xf32>
    %459 = tpu.matmul %458, %9, %cst_95 {dimension_numbers = #tpu.dot_dimension_numbers<[1], [0], [0], [1], [0, 0, 1, 1], [], []>} : vector<8x64xbf16>, vector<64x256xbf16>, vector<8x256xf32> -> vector<8x256xf32>
    %460 = arith.addf %12, %459 : vector<8x256xf32>
    %cst_96 = arith.constant dense<0.000000e+00> : vector<8x256xf32>
    %461 = tpu.matmul %429, %8, %cst_96 {dimension_numbers = #tpu.dot_dimension_numbers<[1], [0], [0], [1], [0, 0, 1, 1], [], []>} : vector<8x64xbf16>, vector<64x256xbf16>, vector<8x256xf32> -> vector<8x256xf32>
    %462 = arith.addf %460, %461 : vector<8x256xf32>
    %463 = vector.extract_strided_slice %462 {offsets = [0, 0], sizes = [8, 64], strides = [1, 1]} : vector<8x256xf32> to vector<8x64xf32>
    %464 = arith.negf %463 : vector<8x64xf32>
    %465 = math.exp %464 : vector<8x64xf32>
    %cst_97 = arith.constant 1.000000e+00 : f32
    %466 = vector.broadcast %cst_97 : f32 to vector<8x64xf32>
    %467 = arith.addf %466, %465 : vector<8x64xf32>
    %468 = arith.divf %466, %467 : vector<8x64xf32>
    %469 = vector.extract_strided_slice %462 {offsets = [0, 64], sizes = [8, 64], strides = [1, 1]} : vector<8x256xf32> to vector<8x64xf32>
    %470 = arith.negf %469 : vector<8x64xf32>
    %471 = math.exp %470 : vector<8x64xf32>
    %cst_98 = arith.constant 1.000000e+00 : f32
    %472 = vector.broadcast %cst_98 : f32 to vector<8x64xf32>
    %473 = arith.addf %472, %471 : vector<8x64xf32>
    %474 = arith.divf %472, %473 : vector<8x64xf32>
    %475 = vector.extract_strided_slice %462 {offsets = [0, 128], sizes = [8, 64], strides = [1, 1]} : vector<8x256xf32> to vector<8x64xf32>
    %476 = math.tanh %475 : vector<8x64xf32>
    %477 = vector.extract_strided_slice %462 {offsets = [0, 192], sizes = [8, 64], strides = [1, 1]} : vector<8x256xf32> to vector<8x64xf32>
    %478 = arith.negf %477 : vector<8x64xf32>
    %479 = math.exp %478 : vector<8x64xf32>
    %cst_99 = arith.constant 1.000000e+00 : f32
    %480 = vector.broadcast %cst_99 : f32 to vector<8x64xf32>
    %481 = arith.addf %480, %479 : vector<8x64xf32>
    %482 = arith.divf %480, %481 : vector<8x64xf32>
    %483 = arith.mulf %474, %426 : vector<8x64xf32>
    %484 = arith.mulf %468, %476 : vector<8x64xf32>
    %485 = arith.addf %483, %484 : vector<8x64xf32>
    %486 = math.tanh %485 : vector<8x64xf32>
    %487 = arith.mulf %482, %486 : vector<8x64xf32>
    %cst_100 = arith.constant dense<0.000000e+00> : vector<8xf32>
    %488 = vector.multi_reduction <add>, %487, %cst_100 [1] : vector<8x64xf32> to vector<8xf32>
    %489 = vector.shape_cast %488 : vector<8xf32> to vector<8x1xf32>
    %cst_101 = arith.constant 6.400000e+01 : f32
    %490 = vector.broadcast %cst_101 : f32 to vector<8x1xf32>
    %491 = arith.divf %489, %490 : vector<8x1xf32>
    %492 = vector.broadcast %491 : vector<8x1xf32> to vector<8x64xf32>
    %493 = arith.subf %487, %492 : vector<8x64xf32>
    %494 = arith.mulf %493, %493 : vector<8x64xf32>
    %cst_102 = arith.constant dense<0.000000e+00> : vector<8xf32>
    %495 = vector.multi_reduction <add>, %494, %cst_102 [1] : vector<8x64xf32> to vector<8xf32>
    %496 = vector.shape_cast %495 : vector<8xf32> to vector<8x1xf32>
    %cst_103 = arith.constant 6.400000e+01 : f32
    %497 = vector.broadcast %cst_103 : f32 to vector<8x1xf32>
    %498 = arith.divf %496, %497 : vector<8x1xf32>
    %cst_104 = arith.constant 9.99999974E-6 : f32
    %499 = vector.broadcast %cst_104 : f32 to vector<8x1xf32>
    %500 = arith.addf %498, %499 : vector<8x1xf32>
    %501 = math.rsqrt %500 : vector<8x1xf32>
    %502 = vector.broadcast %501 : vector<8x1xf32> to vector<8x64xf32>
    %503 = arith.mulf %493, %502 : vector<8x64xf32>
    %c0_105 = arith.constant 0 : index
    %c0_106 = arith.constant 0 : index
    %504 = vector.load %arg7[%c0_105, %c0_106] : memref<1x64xf32, #tpu.memory_space<vmem>>, vector<1x64xf32>
    %505 = vector.broadcast %504 : vector<1x64xf32> to vector<8x64xf32>
    %506 = arith.mulf %503, %505 : vector<8x64xf32>
    %c0_107 = arith.constant 0 : index
    %c0_108 = arith.constant 0 : index
    %507 = vector.load %arg8[%c0_107, %c0_108] : memref<1x64xf32, #tpu.memory_space<vmem>>, vector<1x64xf32>
    %508 = vector.broadcast %507 : vector<1x64xf32> to vector<8x64xf32>
    %509 = arith.addf %506, %508 : vector<8x64xf32>
    %510 = arith.truncf %509 : vector<8x64xf32> to vector<8x64xbf16>
    %c0_109 = arith.constant 0 : index
    %c0_110 = arith.constant 0 : index
    %511 = vector.load %arg9[%c0_109, %c0_110] : memref<64x128xbf16, #tpu.memory_space<vmem>>, vector<64x128xbf16>
    %cst_111 = arith.constant dense<0.000000e+00> : vector<8x128xf32>
    %512 = tpu.matmul %510, %511, %cst_111 {dimension_numbers = #tpu.dot_dimension_numbers<[1], [0], [0], [1], [0, 0, 1, 1], [], []>} : vector<8x64xbf16>, vector<64x128xbf16>, vector<8x128xf32> -> vector<8x128xf32>
    %c0_112 = arith.constant 0 : index
    %c0_113 = arith.constant 0 : index
    %513 = vector.load %arg10[%c0_112, %c0_113] : memref<1x128xf32, #tpu.memory_space<vmem>>, vector<1x128xf32>
    %514 = vector.broadcast %513 : vector<1x128xf32> to vector<8x128xf32>
    %515 = arith.addf %512, %514 : vector<8x128xf32>
    %c0_114 = arith.constant 0 : index
    %c0_115 = arith.constant 0 : index
    %516 = vector.load %arg11[%c0_114, %c0_115] : memref<8x128xf32, #tpu.memory_space<vmem>>, vector<8x128xf32>
    tpu.vector_store %arg11[%c0_114, %c0_115], %515 {strides = array<i32>} : memref<8x128xf32, #tpu.memory_space<vmem>>, vector<8x128xf32>,
    return
  }
}

</mosaic_0001>

<bundles_post_ra>
// kernel: tpu_custom_call.1
= control target key start
LH: loop header
LB: loop body
LE: loop exit
PB: predicated region body
PF: predicated region fallthrough
CT: control target
= control target key end

     0   :  { %16 = vsyncpa [#allocation4], 0  ;;  %s3301_s0 = inlined_call_operand.vmem [shape: bf16[64,18], index: 0, kind: input, shape index: {}]   ;;  %s3302_s1 = inlined_call_operand.vmem [shape: bf16[18,256], index: 1, kind: input, shape index: {}]   ;;  %s3303_s2 = inlined_call_operand.hbm [shape: bf16[64,256], index: 2, kind: input, shape index: {}]   ;;  %s3304_s3 = inlined_call_operand.vmem [shape: f32[1,256], index: 3, kind: input, shape index: {}]   ;;  %s3305_s4 = inlined_call_operand.hbm [shape: bf16[64,256], index: 4, kind: input, shape index: {}]   ;;  %s3306_s5 = inlined_call_operand.hbm [shape: bf16[64,256], index: 5, kind: input, shape index: {}]   ;;  %s3307_s6 = inlined_call_operand.vmem [shape: f32[1,256], index: 6, kind: input, shape index: {}]   ;;  %s3308_s7 = inlined_call_operand.vmem [shape: f32[1,64], index: 7, kind: input, shape index: {}]   ;;  %s3309_s8 = inlined_call_operand.vmem [shape: f32[1,64], index: 8, kind: input, shape index: {}]   ;;  %s3310_s9 = inlined_call_operand.vmem [shape: bf16[64,128], index: 9, kind: input, shape index: {}]   ;;  %s3311_s10 = inlined_call_operand.vmem [shape: f32[1,128], index: 10, kind: input, shape index: {}]   ;;  %s3312_s11 = inlined_call_operand.hbm [shape: f32[8,128], index: 11, kind: output, shape index: {}]  }
   0x1   :  { %17 = vsyncpa [#allocation7], 0 }
   0x2   :  { %18 = vsyncpa [#allocation5], 0  ;;  %s2593_s17 = smov [#allocation6]   ;;  %s2594_s19 = smov [#allocation3]  }
   0x3   :  { %s42_s18 = sshll.u32 %s2593_s17, 4  ;;  %s28_s20 = sshll.u32 %s2594_s19, 4  ;;  %s43_s18 = int_to_ptr.vmem [resolvable:$true] %s42_s18  ;;  %s2663_s20 = int_to_ptr.vmem [resolvable:$true] %s28_s20 }
   0x4   :  { %s2499_s23 = scalar_lea.hbm %s3305_s4, 1024 }
   0x5   :  { %p2500_p0 = scmp.ne.s32.totalorder %s3305_s4, %s2499_s23  ;;  %p2503_p1 = scmp.lt.u32.totalorder %s2499_s23, %s3305_s4 }
   0x7   :  { %p2505_p2 = pnand %p2503_p1, %p2500_p0 }
   0x9   :  { %2508 = shalt.err (!%p2505_p2)
}
   0xa   :  { %s2509_s28 = scalar_lea.vmem %s43_s18, 1024  ;;  %p2514_p4 = scmp.lt.s32.totalorder %s43_s18, %s43_s18 }
   0xb   :  { %p2510_p3 = scmp.ne.s32.totalorder %s43_s18, %s2509_s28  ;;  %p2515_p5 = scmp.lt.s32.totalorder %s2509_s28, %s2509_s28 }
   0xd   :  { %p2516_p6 = por %p2515_p5, %p2514_p4 }
   0xf   :  { %p2517_p7 = pnand %p2516_p6, %p2510_p3 }
  0x11   :  { %2520 = shalt.err (!%p2517_p7)
}
  0x12   :  { %s2595_s29 = smov 128   ;;  %s2596_s30 = smov 8  }
  0x13   :  { %48 = dma.hbm_to_vmem [thread:$0]  %s3305_s4, 1024, %s43_s18, [#allocation7], %s2595_s29, %s2595_s29, %s2596_s30  }
  0x14   :  { %s2521_s16 = scalar_lea.hbm %s3303_s2, 1024 }
  0x15   :  { %p2522_p8 = scmp.ne.s32.totalorder %s3303_s2, %s2521_s16  ;;  %p2525_p9 = scmp.lt.u32.totalorder %s2521_s16, %s3303_s2 }
  0x17   :  { %p2527_p10 = pnand %p2525_p9, %p2522_p8 }
  0x19   :  { %2530 = shalt.err (!%p2527_p10)
}
  0x1a   :  { %s2531_s23 = scalar_lea.vmem %s2663_s20, 1024  ;;  %p2536_p12 = scmp.lt.s32.totalorder %s2663_s20, %s2663_s20 }
  0x1b   :  { %p2532_p11 = scmp.ne.s32.totalorder %s2663_s20, %s2531_s23  ;;  %p2537_p13 = scmp.lt.s32.totalorder %s2531_s23, %s2531_s23 }
  0x1d   :  { %p2538_p0 = por %p2537_p13, %p2536_p12 }
  0x1f   :  { %p2539_p1 = pnand %p2538_p0, %p2532_p11 }
  0x21   :  { %2542 = shalt.err (!%p2539_p1)
}
  0x22   :  { %34 = dma.hbm_to_vmem [thread:$0]  %s3303_s2, 1024, %s2663_s20, [#allocation4], %s2595_s29, %s2595_s29, %s2596_s30  }
  0x23   :  { %s2597_s24 = smov [#allocation8]   ;;  %s2543_s28 = scalar_lea.hbm %s3306_s5, 1024 }
  0x24   :  { %s54_s25 = sshll.u32 %s2597_s24, 4  ;;  %p2544_p2 = scmp.ne.s32.totalorder %s3306_s5, %s2543_s28  ;;  %s55_s25 = int_to_ptr.vmem [resolvable:$true] %s54_s25 }
  0x25   :  { %p2547_p3 = scmp.lt.u32.totalorder %s2543_s28, %s3306_s5 }
  0x27   :  { %p2549_p4 = pnand %p2547_p3, %p2544_p2 }
  0x29   :  { %2552 = shalt.err (!%p2549_p4)
}
  0x2a   :  { %s2553_s16 = scalar_lea.vmem %s55_s25, 1024  ;;  %p2558_p6 = scmp.lt.s32.totalorder %s55_s25, %s55_s25 }
  0x2b   :  { %p2554_p5 = scmp.ne.s32.totalorder %s55_s25, %s2553_s16  ;;  %p2559_p7 = scmp.lt.s32.totalorder %s2553_s16, %s2553_s16 }
  0x2d   :  { %p2560_p8 = por %p2559_p7, %p2558_p6 }
  0x2f   :  { %p2561_p9 = pnand %p2560_p8, %p2554_p5 }
  0x31   :  { %2564 = shalt.err (!%p2561_p9)
}
  0x32   :  { %60 = dma.hbm_to_vmem [thread:$0]  %s3306_s5, 1024, %s55_s25, [#allocation7], %s2595_s29, %s2595_s29, %s2596_s30  }
  0x33   :  { %2587 = dma.done.wait [#allocation4], 1024  }
  0x34   :  { %2588 = vsyncadd [#allocation4], 4294966272 }
  0x35   :  { %2589 = dma.done.wait [#allocation7], 2048  }
  0x36   :  { %2590 = vsyncadd [#allocation7], 4294965248  ;;  %v2598_v0 = vmov 0   ;;  %v2717_v1 = vld [vmem:[#allocation3 + $0x4] ss:$8 sps:$4 sm:$0xff]   ;;  %vm152_vm0 = vcmask 1040384   ;;  %v94_v16 = vlaneseq }
  0x37   :  { %191 = vmatprep.mubr.bf16.mxu0 %v2598_v0  ;;  %362 = vmatprep.mubr.bf16.mxu1 %v2598_v0  ;;  %v2719_v2 = vld [vmem:[#allocation3] ss:$8 sps:$4 sm:$0xff]   ;;  %v2235_v3 = vld [vmem:[%s3302_s1 + $0x4] ss:$8 sps:$4 sm:$0xff]   ;;  %v2731_v6 = vld [vmem:[#allocation3 + $0x10] ss:$8 sps:$4 sm:$0xff]  }
  0x38   :  { %330 = vmatprep.subr.bf16.mxu1 %v2717_v1  ;;  %v2237_v4 = vld [vmem:[%s3302_s1] ss:$8 sps:$4 sm:$0xff]   ;;  %v2729_v5 = vld [vmem:[#allocation3 + $0x14] ss:$8 sps:$4 sm:$0xff]   ;;  %159 = vmatprep.subr.bf16.mxu0 %v2235_v3  ;;  %v2737_v10 = vld [vmem:[#allocation3 + $0x24] ss:$8 sps:$4 sm:$0xff]  }
  0x39   :  { %331 = vmatpush1.bf16.msra.mxu1 %v2719_v2  ;;  %v91_v7 = vld [vmem:[%s3302_s1 + $0x10] sm:$0x11]  ;;  %160 = vmatpush1.bf16.msra.mxu0 %v2237_v4  ;;  %v2740_v12 = vld [vmem:[#allocation3 + $0x20] ss:$8 sps:$4 sm:$0xff]   ;;  %vm139_vm1 = vcmask 146432   ;;  %v2765_v17 = vshrl.u32 %v94_v16, 7 }
  0x3a   :  { %332 = vmatprep.subr.bf16.mxu1 %v2729_v5  ;;  %v2065_v8 = vcombine.high %v91_v7, %v91_v7  ;;  %v2064_v9 = vcombine.low %v91_v7, %v91_v7  ;;  %v2246_v13 = vld [vmem:[%s3301_s0] sm:$0xff]   ;;  %v2746_v14 = vld [vmem:[#allocation3 + $0x34] ss:$8 sps:$4 sm:$0xff]   ;;  %v2748_v15 = vld [vmem:[#allocation3 + $0x30] ss:$8 sps:$4 sm:$0xff]   ;;  %vm326_vm2 = vcmask 523264  }
  0x3b   :  { %v96_v18 = vsub.s32 0, %v2765_v17  ;;  %v92_v19 = vld [vmem:[%s3304_s3] sm:$0x3]  ;;  %v100_v20 = vsub.s32 1, %v2765_v17  ;;  %s2599_s3 = smov 64   ;;  %v2250_v41 = vld [vmem:[%s3301_s0 + $0x8] sm:$0xff]  }
  0x3c   :  { %2066 = vmatprep.subr.msk.bf16.mxu0 %vm152_vm0, %v2065_v8  ;;  %v154_v11 = vsel %vm152_vm0, %v2064_v9, 0  ;;  %v2790_v42 = vld [vmem:[#allocation6 + $0x4] ss:$8 sps:$4 sm:$0xff]   ;;  %v2792_v43 = vld [vmem:[#allocation6] ss:$8 sps:$4 sm:$0xff]   ;;  %v2251_v47 = vld [vmem:[%s3301_s0 + $0x10] sm:$0xff]  }
  0x3d   :  { %333 = vmatpush1.bf16.msra.mxu1 %v2731_v6  ;;  %162 = vmatpush1.bf16.msra.mxu0 %v154_v11  ;;  %v2774_v21 = vrot.slane %v92_v19, %v96_v18  ;;  %v2778_v23 = vrot.slane %v92_v19, %v100_v20  ;;  %v2794_v44 = vld [vmem:[#allocation6 + $0x14] ss:$8 sps:$4 sm:$0xff]   ;;  %v2800_v45 = vld [vmem:[#allocation6 + $0x10] ss:$8 sps:$4 sm:$0xff]   ;;  %v2803_v46 = vld [vmem:[#allocation6 + $0x24] ss:$8 sps:$4 sm:$0xff]  }
  0x3e   :  { %334 = vmatprep.subr.bf16.mxu1 %v2737_v10  ;;  %593 = vmatprep.subr.bf16.mxu0 %v2717_v1  ;;  %v2810_v48 = vld [vmem:[#allocation6 + $0x20] ss:$8 sps:$4 sm:$0xff]   ;;  %v2813_v49 = vld [vmem:[#allocation6 + $0x34] ss:$8 sps:$4 sm:$0xff]   ;;  %v2818_v50 = vld [vmem:[#allocation6 + $0x30] ss:$8 sps:$4 sm:$0xff]  }
  0x3f   :  { %v2821_v51 = vld [vmem:[#allocation8 + $0x4] ss:$8 sps:$4 sm:$0xff]   ;;  %vm2601_vm3 = vmmov 0   ;;  %s2602_s30 = smov [#allocation9]  }
  0x40   :  { %2067 = vmatmul.mubr.msk.bf16.vlgmr.msra.gmra.mrb[0].mxu0 %vm139_vm1, %v2246_v13  ;;  %v2258_v52 = vld [vmem:[%s3301_s0 + $0x18] sm:$0xff]   ;;  %s2048_s21 = sshll.u32 %s2602_s30, 4  ;;  %s2049_s21 = int_to_ptr.vmem [resolvable:$true] %s2048_s21 }
  0x41   :  { %335 = vmatpush1.bf16.msra.mxu1 %v2740_v12  ;;  %594 = vmatpush1.bf16.msra.mxu0 %v2719_v2  ;;  %s2565_s22 = scalar_lea.vmem %s2049_s21, 128  ;;  %p2570_p11 = scmp.lt.s32.totalorder %s2049_s21, %s2049_s21 }
  0x42   :  { %336 = vmatprep.subr.bf16.mxu1 %v2746_v14  ;;  %201 = vmatprep.mubr.bf16.mxu0 %v2598_v0  ;;  %p2566_p10 = scmp.ne.s32.totalorder %s2049_s21, %s2565_s22  ;;  %p2571_p12 = scmp.lt.s32.totalorder %s2565_s22, %s2565_s22 }
  0x43   :  { %595 = vmatprep.subr.bf16.mxu0 %v2729_v5 }
  0x44   :  { %p2572_p13 = por %p2571_p12, %p2570_p11 }
  0x45   :  { %337 = vmatpush1.bf16.msra.mxu1 %v2748_v15  ;;  %596 = vmatpush1.bf16.msra.mxu0 %v2731_v6 }
  0x46   :  { %597 = vmatprep.subr.bf16.mxu0 %v2737_v10  ;;  %442 = vmatprep.subr.bf16.mxu1 %v2790_v42  ;;  %p2573_p0 = pnand %p2572_p13, %p2566_p10 }
  0x48   :  { %363 = vmatmul.mubr.bf16.vlgmr.msra.gmra.mrb[0].mxu1 %v2598_v0  ;;  %2068 = vmatmul.mubr.msk.bf16.gmra.mrb[4].mxu0 %vm139_vm1, %v2250_v41 }
  0x49   :  { %474 = vmatprep.mubr.bf16.mxu1 %v2598_v0  ;;  %598 = vmatpush1.bf16.msra.mxu0 %v2740_v12 }
  0x4a   :  { %599 = vmatprep.subr.bf16.mxu0 %v2746_v14  ;;  %211 = vmatprep.mubr.bf16.mxu0 %v2598_v0 }
  0x4b   :  { %443 = vmatpush1.bf16.msra.mxu1 %v2792_v43 }
  0x4c   :  { %444 = vmatprep.subr.bf16.mxu1 %v2794_v44 }
  0x4d   :  { %600 = vmatpush1.bf16.msra.mxu0 %v2748_v15 }
  0x4e   :  { %665 = vmatprep.subr.bf16.mxu0 %v2790_v42 }
  0x4f   :  { %445 = vmatpush1.bf16.msra.mxu1 %v2800_v45 }
  0x50   :  { %446 = vmatprep.subr.bf16.mxu1 %v2803_v46  ;;  %2069 = vmatmul.mubr.msk.bf16.gmra.mrb[8].mxu0 %vm139_vm1, %v2251_v47 }
  0x51   :  { %221 = vmatprep.mubr.bf16.mxu0 %v2598_v0 }
  0x53   :  { %447 = vmatpush1.bf16.msra.mxu1 %v2810_v48 }
  0x54   :  { %448 = vmatprep.subr.bf16.mxu1 %v2813_v49 }
  0x57   :  { %449 = vmatpush1.bf16.msra.mxu1 %v2818_v50 }
  0x58   :  { %525 = vmatprep.subr.bf16.mxu1 %v2821_v51  ;;  %2070 = vmatmul.mubr.msk.bf16.gmra.mrb[12].mxu0 %vm139_vm1, %v2258_v52 }
  0x59   :  { %625 = vmatprep.mubr.bf16.mxu0 %v2598_v0 }
 0x113   :  { %v193_v22 = vpop.f32.mrb[0].mxu0 }
 0x114   :  { %v195_v24 = vpop.f32.mrb[1].mxu0  ;;  %v194_v26 = vadd.f32 %v193_v22, %v2774_v21 }
 0x115   :  { %v2780_v25 = vpop.f32.mrb[2].mxu0  ;;  %v196_v28 = vadd.f32 %v195_v24, %v2778_v23 }
 0x116   :  { %v2783_v27 = vpop.f32.mrb[3].mxu0 }
 0x11b   :  { %v364_v29 = vpop.f32.mrb[0].mxu1  ;;  %v2834_v63 = vpop.f32.mrb[4].mxu0 }
 0x11c   :  { %v371_v30 = vadd.f32 %v364_v29, %v194_v26  ;;  %v366_v31 = vpop.f32.mrb[1].mxu1  ;;  %v2836_v3 = vpop.f32.mrb[5].mxu0  ;;  %v2858_v26 = vld [vmem:[#allocation8] ss:$8 sps:$4 sm:$0xff]  }
 0x11d   :  { %v372_v32 = vadd.f32 %v366_v31, %v196_v28  ;;  %v368_v33 = vpop.f32.mrb[2].mxu1  ;;  %v2838_v4 = vpop.f32.mrb[6].mxu0  ;;  %v2860_v28 = vld [vmem:[#allocation8 + $0x14] ss:$8 sps:$4 sm:$0xff]   ;;  %v2869_v31 = vld [vmem:[#allocation8 + $0x24] ss:$8 sps:$4 sm:$0xff]  }
 0x11e   :  { %v2079_v34 = vmul.f32 -1.442695, %v371_v30  ;;  %v369_v35 = vpop.f32.mrb[3].mxu1  ;;  %v2840_v7 = vpop.f32.mrb[7].mxu0  ;;  %v2865_v30 = vld [vmem:[#allocation8 + $0x10] ss:$8 sps:$4 sm:$0xff]  }
 0x11f   :  { %v2080_v53 = vmul.f32 -1.442695, %v372_v32  ;;  %v2878_v33 = vld [vmem:[#allocation8 + $0x34] ss:$8 sps:$4 sm:$0xff]   ;;  %v198_v35 = vadd.f32 %v2780_v25, %v2774_v21 }
 0x120   :  { %2281 = vpow2.f32 %v2079_v34  ;;  %v2883_v34 = vld [vmem:[#allocation8 + $0x30] ss:$8 sps:$4 sm:$0xff]  }
 0x121   :  { %2283 = vtanh.f32 %v372_v32  ;;  %v2875_v32 = vld [vmem:[#allocation8 + $0x20] ss:$8 sps:$4 sm:$0xff]  }
 0x123   :  { %v2842_v8 = vpop.f32.mrb[8].mxu0 }
 0x124   :  { %v2844_v9 = vpop.f32.mrb[9].mxu0 }
 0x125   :  { %v2846_v11 = vpop.f32.mrb[10].mxu0 }
 0x126   :  { %v2848_v13 = vpop.f32.mrb[11].mxu0 }
 0x12a   :  { %v2282_v36 = vpop.eup %2281 }
 0x12b   :  { %v376_v37 = vadd.f32 1.0, %v2282_v36  ;;  %v2284_v38 = vpop.eup %2283  ;;  %v2850_v16 = vpop.f32.mrb[12].mxu0  ;;  %v200_v36 = vadd.f32 %v2783_v27, %v2778_v23 }
 0x12c   :  { %v2852_v19 = vpop.f32.mrb[13].mxu0 }
 0x12d   :  { %2285 = vrcp.f32 %v376_v37  ;;  %v2854_v22 = vpop.f32.mrb[14].mxu0 }
 0x12e   :  { %2287 = vpow2.f32 %v2080_v53  ;;  %v2856_v24 = vpop.f32.mrb[15].mxu0  ;;  %v272_v53 = vld [vmem:[%s3307_s6] sm:$0x3] }
 0x137   :  { %v2286_v39 = vpop.eup %2285 }
 0x138   :  { %v387_v40 = vmul.f32 %v2286_v39, %v2284_v38  ;;  %v2288_v54 = vpop.eup %2287  ;;  %v386_v56 = vmul.f32 0.0, %v2286_v39 }
 0x139   :  { %v383_v55 = vadd.f32 1.0, %v2288_v54  ;;  %v2911_v54 = vrot.slane %v272_v53, %v96_v18 }
 0x13a   :  { %389 = vrot.lane.b32.xlu0 %v387_v40, %s2599_s3 }
 0x13b   :  { %2289 = vrcp.f32 %v383_v55 }
 0x145   :  { %v2290_v59 = vpop.eup %2289 }
 0x1ac   :  { %v390_v57 = vpop.permute.xlu0 %389 }
 0x1ad   :  { %v2830_v58 = vadd.f32 %v390_v57, %v386_v56 }
 0x1af   :  { %2291 = vtanh.f32 %v2830_v58 }
 0x1b9   :  { %v2292_v60 = vpop.eup %2291 }
 0x1ba   :  { %v394_v61 = vmul.f32 %v2292_v60, %v2290_v59 }
 0x1bc   :  { %v395_v62 = vpack.c.bf16 %v394_v61, %v394_v61 }
 0x1be   :  { %397 = vrot.lane.b32.xlu0 %v395_v62, %s2599_s3  ;;  %v2916_v62 = vrot.slane %v272_v53, %v100_v20 }
 0x230   :  { %v398_v29 = vpop.permute.xlu0 %397 }
 0x231   :  { %2089 = vmatmul.mubr.msk.bf16.vlgmr.msra.gmra.mrb[4].mxu1 %vm326_vm2, %v398_v29  ;;  %2100 = vmatmul.mubr.msk.bf16.vlgmr.msra.gmra.mrb[16].mxu0 %vm326_vm2, %v398_v29 }
 0x232   :  { %526 = vmatpush1.bf16.msra.mxu1 %v2858_v26  ;;  %557 = vmatprep.mubr.bf16.mxu1 %v2598_v0 }
 0x233   :  { %527 = vmatprep.subr.bf16.mxu1 %v2860_v28  ;;  %666 = vmatpush1.bf16.msra.mxu0 %v2792_v43 }
 0x234   :  { %667 = vmatprep.subr.bf16.mxu0 %v2794_v44  ;;  %697 = vmatprep.mubr.bf16.mxu0 %v2598_v0 }
 0x236   :  { %528 = vmatpush1.bf16.msra.mxu1 %v2865_v30 }
 0x237   :  { %529 = vmatprep.subr.bf16.mxu1 %v2869_v31  ;;  %668 = vmatpush1.bf16.msra.mxu0 %v2800_v45 }
 0x238   :  { %669 = vmatprep.subr.bf16.mxu0 %v2803_v46 }
 0x23a   :  { %530 = vmatpush1.bf16.msra.mxu1 %v2875_v32 }
 0x23b   :  { %531 = vmatprep.subr.bf16.mxu1 %v2878_v33  ;;  %670 = vmatpush1.bf16.msra.mxu0 %v2810_v48 }
 0x23c   :  { %671 = vmatprep.subr.bf16.mxu0 %v2813_v49 }
 0x23e   :  { %532 = vmatpush1.bf16.msra.mxu1 %v2883_v34 }
 0x23f   :  { %782 = vmatprep.subr.bf16.mxu1 %v2717_v1  ;;  %672 = vmatpush1.bf16.msra.mxu0 %v2818_v50 }
 0x240   :  { %714 = vmatprep.subr.bf16.mxu0 %v2821_v51 }
 0x241   :  { %558 = vmatmul.mubr.bf16.vlgmr.msra.gmra.mrb[4].mxu1 %v2598_v0 }
 0x242   :  { %783 = vmatpush1.bf16.msra.mxu1 %v2719_v2  ;;  %814 = vmatprep.mubr.bf16.mxu1 %v2598_v0 }
 0x243   :  { %784 = vmatprep.subr.bf16.mxu1 %v2729_v5 }
 0x246   :  { %785 = vmatpush1.bf16.msra.mxu1 %v2731_v6 }
 0x247   :  { %786 = vmatprep.subr.bf16.mxu1 %v2737_v10 }
 0x24a   :  { %787 = vmatpush1.bf16.msra.mxu1 %v2740_v12 }
 0x24b   :  { %788 = vmatprep.subr.bf16.mxu1 %v2746_v14 }
 0x24e   :  { %789 = vmatpush1.bf16.msra.mxu1 %v2748_v15 }
 0x24f   :  { %854 = vmatprep.subr.bf16.mxu1 %v2790_v42 }
 0x304   :  { %v627_v37 = vpop.f32.mrb[16].mxu0 }
 0x305   :  { %v634_v38 = vadd.f32 %v627_v37, %v198_v35  ;;  %v629_v39 = vpop.f32.mrb[17].mxu0 }
 0x306   :  { %v635_v40 = vadd.f32 %v629_v39, %v200_v36  ;;  %v631_v41 = vpop.f32.mrb[18].mxu0 }
 0x307   :  { %v2101_v47 = vmul.f32 -1.442695, %v634_v38  ;;  %v632_v52 = vpop.f32.mrb[19].mxu0 }
 0x308   :  { %v2102_v52 = vmul.f32 -1.442695, %v635_v40 }
 0x309   :  { %2293 = vpow2.f32 %v2101_v47 }
 0x30a   :  { %2295 = vtanh.f32 %v635_v40 }
 0x313   :  { %v2294_v25 = vpop.eup %2293 }
 0x314   :  { %v639_v55 = vadd.f32 1.0, %v2294_v25  ;;  %v559_v56 = vpop.f32.mrb[4].mxu1  ;;  %v2296_v29 = vpop.eup %2295 }
 0x315   :  { %v2174_v27 = vadd.f32 %v559_v56, %v2911_v54  ;;  %v561_v57 = vpop.f32.mrb[5].mxu1 }
 0x316   :  { %2297 = vrcp.f32 %v639_v55  ;;  %v563_v59 = vpop.f32.mrb[6].mxu1  ;;  %v2175_v18 = vadd.f32 %v561_v57, %v2916_v62 }
 0x317   :  { %v2098_v60 = vmul.f32 -1.442695, %v2174_v27  ;;  %v564_v61 = vpop.f32.mrb[7].mxu1 }
 0x318   :  { %v2099_v20 = vmul.f32 -1.442695, %v2175_v18 }
 0x319   :  { %2299 = vpow2.f32 %v2098_v60 }
 0x31a   :  { %2301 = vtanh.f32 %v2175_v18 }
 0x320   :  { %v2298_v35 = vpop.eup %2297 }
 0x321   :  { %v650_v36 = vmul.f32 %v2298_v35, %v2296_v29  ;;  %v649_v25 = vmul.f32 %v2298_v35, %v2830_v58 }
 0x323   :  { %v2300_v37 = vpop.eup %2299  ;;  %652 = vrot.lane.b32.xlu1 %v650_v36, %s2599_s3 }
 0x324   :  { %v571_v38 = vadd.f32 1.0, %v2300_v37  ;;  %v2302_v39 = vpop.eup %2301 }
 0x326   :  { %2303 = vrcp.f32 %v571_v38 }
 0x327   :  { %2305 = vpow2.f32 %v2102_v52  ;;  %v206_v52 = vadd.f32 %v2836_v3, %v2778_v23 }
 0x328   :  { %2307 = vpow2.f32 %v2099_v20 }
 0x330   :  { %v2304_v41 = vpop.eup %2303 }
 0x331   :  { %v582_v47 = vmul.f32 %v2304_v41, %v2302_v39  ;;  %v2306_v17 = vpop.eup %2305  ;;  %v581_v29 = vmul.f32 0.0, %v2304_v41 }
 0x332   :  { %v646_v53 = vadd.f32 1.0, %v2306_v17  ;;  %v2308_v27 = vpop.eup %2307 }
 0x333   :  { %584 = vrot.lane.b32.xlu1 %v582_v47, %s2599_s3  ;;  %v578_v60 = vadd.f32 1.0, %v2308_v27  ;;  %v204_v47 = vadd.f32 %v2834_v63, %v2774_v21 }
 0x334   :  { %2309 = vrcp.f32 %v646_v53 }
 0x33e   :  { %v2310_v57 = vpop.eup %2309 }
 0x395   :  { %v653_v55 = vpop.permute.xlu1 %652 }
 0x396   :  { %v2922_v56 = vadd.f32 %v653_v55, %v649_v25 }
 0x398   :  { %2311 = vtanh.f32 %v2922_v56 }
 0x399   :  { %2313 = vrcp.f32 %v578_v60 }
 0x3a2   :  { %v2312_v59 = vpop.eup %2311 }
 0x3a3   :  { %v657_v61 = vmul.f32 %v2312_v59, %v2310_v57  ;;  %v2314_v58 = vpop.eup %2313 }
 0x3a5   :  { %v585_v40 = vpop.permute.xlu1 %584  ;;  %v658_v36 = vpack.c.bf16 %v657_v61, %v657_v61 }
 0x3a6   :  { %v2925_v37 = vadd.f32 %v585_v40, %v581_v29 }
 0x3a7   :  { %660 = vrot.lane.b32.xlu0 %v658_v36, %s2599_s3 }
 0x3a8   :  { %2315 = vtanh.f32 %v2925_v37 }
 0x3b2   :  { %v2316_v35 = vpop.eup %2315 }
 0x3b3   :  { %v589_v18 = vmul.f32 %v2316_v35, %v2314_v58 }
 0x3b5   :  { %v590_v38 = vpack.c.bf16 %v589_v18, %v589_v18 }
 0x3b7   :  { %709 = vrot.lane.b32.xlu1 %v590_v38, %s2599_s3 }
 0x419   :  { %v661_v39 = vpop.permute.xlu0 %660 }
 0x41a   :  { %2103 = vmatmul.mubr.msk.bf16.vlgmr.msra.gmra.mrb[20].mxu0 %vm326_vm2, %v661_v39  ;;  %2107 = vmatmul.mubr.msk.bf16.vlgmr.msra.gmra.mrb[8].mxu1 %vm326_vm2, %v661_v39 }
 0x41b   :  { %715 = vmatpush1.bf16.msra.mxu0 %v2858_v26  ;;  %746 = vmatprep.mubr.bf16.mxu0 %v2598_v0 }
 0x41c   :  { %716 = vmatprep.subr.bf16.mxu0 %v2860_v28  ;;  %855 = vmatpush1.bf16.msra.mxu1 %v2792_v43 }
 0x41d   :  { %856 = vmatprep.subr.bf16.mxu1 %v2794_v44  ;;  %886 = vmatprep.mubr.bf16.mxu1 %v2598_v0 }
 0x41f   :  { %717 = vmatpush1.bf16.msra.mxu0 %v2865_v30 }
 0x420   :  { %718 = vmatprep.subr.bf16.mxu0 %v2869_v31  ;;  %857 = vmatpush1.bf16.msra.mxu1 %v2800_v45 }
 0x421   :  { %858 = vmatprep.subr.bf16.mxu1 %v2803_v46 }
 0x423   :  { %719 = vmatpush1.bf16.msra.mxu0 %v2875_v32 }
 0x424   :  { %720 = vmatprep.subr.bf16.mxu0 %v2878_v33  ;;  %859 = vmatpush1.bf16.msra.mxu1 %v2810_v48 }
 0x425   :  { %860 = vmatprep.subr.bf16.mxu1 %v2813_v49 }
 0x427   :  { %721 = vmatpush1.bf16.msra.mxu0 %v2883_v34 }
 0x428   :  { %971 = vmatprep.subr.bf16.mxu0 %v2717_v1  ;;  %861 = vmatpush1.bf16.msra.mxu1 %v2818_v50 }
 0x429   :  { %v710_v41 = vpop.permute.xlu1 %709  ;;  %903 = vmatprep.subr.bf16.mxu1 %v2821_v51 }
 0x42a   :  { %2104 = vmatmul.mubr.msk.bf16.vlgmr.msra.gmra.mrb[20].mxu0 %vm326_vm2, %v710_v41 }
 0x42b   :  { %972 = vmatpush1.bf16.msra.mxu0 %v2719_v2  ;;  %1003 = vmatprep.mubr.bf16.mxu0 %v2598_v0 }
 0x42c   :  { %973 = vmatprep.subr.bf16.mxu0 %v2729_v5 }
 0x42f   :  { %974 = vmatpush1.bf16.msra.mxu0 %v2731_v6 }
 0x430   :  { %975 = vmatprep.subr.bf16.mxu0 %v2737_v10 }
 0x433   :  { %976 = vmatpush1.bf16.msra.mxu0 %v2740_v12 }
 0x434   :  { %977 = vmatprep.subr.bf16.mxu0 %v2746_v14 }
 0x437   :  { %978 = vmatpush1.bf16.msra.mxu0 %v2748_v15 }
 0x438   :  { %1043 = vmatprep.subr.bf16.mxu0 %v2790_v42 }
 0x4ed   :  { %v816_v17 = vpop.f32.mrb[8].mxu1 }
 0x4ee   :  { %v823_v20 = vadd.f32 %v816_v17, %v204_v47  ;;  %v818_v53 = vpop.f32.mrb[9].mxu1 }
 0x4ef   :  { %v824_v25 = vadd.f32 %v818_v53, %v206_v52  ;;  %v820_v55 = vpop.f32.mrb[10].mxu1 }
 0x4f0   :  { %v2108_v27 = vmul.f32 -1.442695, %v823_v20  ;;  %v821_v57 = vpop.f32.mrb[11].mxu1 }
 0x4f1   :  { %v2109_v20 = vmul.f32 -1.442695, %v824_v25 }
 0x4f2   :  { %2317 = vpow2.f32 %v2108_v27 }
 0x4f3   :  { %2319 = vtanh.f32 %v824_v25 }
 0x4fc   :  { %v2318_v59 = vpop.eup %2317 }
 0x4fd   :  { %v828_v60 = vadd.f32 1.0, %v2318_v59  ;;  %v748_v61 = vpop.f32.mrb[20].mxu0  ;;  %v2320_v3 = vpop.eup %2319 }
 0x4fe   :  { %v2176_v29 = vadd.f32 %v748_v61, %v2911_v54  ;;  %v750_v40 = vpop.f32.mrb[21].mxu0 }
 0x4ff   :  { %2321 = vrcp.f32 %v828_v60  ;;  %v752_v63 = vpop.f32.mrb[22].mxu0  ;;  %v2177_v18 = vadd.f32 %v750_v40, %v2916_v62 }
 0x500   :  { %v2105_v36 = vmul.f32 -1.442695, %v2176_v29  ;;  %v753_v58 = vpop.f32.mrb[23].mxu0 }
 0x501   :  { %v2106_v55 = vmul.f32 -1.442695, %v2177_v18 }
 0x502   :  { %2323 = vpow2.f32 %v2105_v36 }
 0x503   :  { %2325 = vtanh.f32 %v2177_v18 }
 0x509   :  { %v2322_v35 = vpop.eup %2321 }
 0x50a   :  { %v839_v38 = vmul.f32 %v2322_v35, %v2320_v3  ;;  %v838_v57 = vmul.f32 %v2322_v35, %v2922_v56 }
 0x50c   :  { %v2324_v39 = vpop.eup %2323  ;;  %841 = vrot.lane.b32.xlu0 %v839_v38, %s2599_s3 }
 0x50d   :  { %v760_v41 = vadd.f32 1.0, %v2324_v39  ;;  %v2326_v47 = vpop.eup %2325 }
 0x50f   :  { %2327 = vrcp.f32 %v760_v41 }
 0x510   :  { %2329 = vpow2.f32 %v2109_v20 }
 0x511   :  { %2331 = vpow2.f32 %v2106_v55 }
 0x519   :  { %v2328_v52 = vpop.eup %2327 }
 0x51a   :  { %v771_v17 = vmul.f32 %v2328_v52, %v2326_v47  ;;  %v2330_v53 = vpop.eup %2329  ;;  %v770_v25 = vmul.f32 %v2328_v52, %v2925_v37  ;;  %v208_v47 = vadd.f32 %v2838_v4, %v2774_v21  ;;  %v210_v52 = vadd.f32 %v2840_v7, %v2778_v23 }
 0x51b   :  { %v835_v27 = vadd.f32 1.0, %v2330_v53  ;;  %v2332_v61 = vpop.eup %2331 }
 0x51c   :  { %773 = vrot.lane.b32.xlu1 %v771_v17, %s2599_s3  ;;  %v767_v63 = vadd.f32 1.0, %v2332_v61 }
 0x51d   :  { %2333 = vrcp.f32 %v835_v27 }
 0x527   :  { %v2334_v29 = vpop.eup %2333 }
 0x57e   :  { %v842_v59 = vpop.permute.xlu0 %841 }
 0x57f   :  { %v2969_v60 = vadd.f32 %v842_v59, %v838_v57 }
 0x581   :  { %2335 = vtanh.f32 %v2969_v60 }
 0x582   :  { %2337 = vrcp.f32 %v767_v63 }
 0x58b   :  { %v2336_v40 = vpop.eup %2335 }
 0x58c   :  { %v846_v36 = vmul.f32 %v2336_v40, %v2334_v29  ;;  %v2338_v56 = vpop.eup %2337 }
 0x58e   :  { %v774_v58 = vpop.permute.xlu1 %773  ;;  %v847_v3 = vpack.c.bf16 %v846_v36, %v846_v36 }
 0x58f   :  { %v2973_v18 = vadd.f32 %v774_v58, %v770_v25 }
 0x590   :  { %849 = vrot.lane.b32.xlu0 %v847_v3, %s2599_s3 }
 0x591   :  { %2339 = vtanh.f32 %v2973_v18 }
 0x59b   :  { %v2340_v35 = vpop.eup %2339 }
 0x59c   :  { %v778_v38 = vmul.f32 %v2340_v35, %v2338_v56 }
 0x59e   :  { %v779_v39 = vpack.c.bf16 %v778_v38, %v778_v38 }
 0x5a0   :  { %898 = vrot.lane.b32.xlu1 %v779_v39, %s2599_s3 }
 0x602   :  { %v850_v41 = vpop.permute.xlu0 %849 }
 0x603   :  { %2110 = vmatmul.mubr.msk.bf16.vlgmr.msra.gmra.mrb[12].mxu1 %vm326_vm2, %v850_v41  ;;  %2114 = vmatmul.mubr.msk.bf16.vlgmr.msra.gmra.mrb[24].mxu0 %vm326_vm2, %v850_v41 }
 0x604   :  { %904 = vmatpush1.bf16.msra.mxu1 %v2858_v26  ;;  %935 = vmatprep.mubr.bf16.mxu1 %v2598_v0 }
 0x605   :  { %905 = vmatprep.subr.bf16.mxu1 %v2860_v28  ;;  %1044 = vmatpush1.bf16.msra.mxu0 %v2792_v43 }
 0x606   :  { %1045 = vmatprep.subr.bf16.mxu0 %v2794_v44  ;;  %1075 = vmatprep.mubr.bf16.mxu0 %v2598_v0 }
 0x608   :  { %906 = vmatpush1.bf16.msra.mxu1 %v2865_v30 }
 0x609   :  { %907 = vmatprep.subr.bf16.mxu1 %v2869_v31  ;;  %1046 = vmatpush1.bf16.msra.mxu0 %v2800_v45 }
 0x60a   :  { %1047 = vmatprep.subr.bf16.mxu0 %v2803_v46 }
 0x60c   :  { %908 = vmatpush1.bf16.msra.mxu1 %v2875_v32 }
 0x60d   :  { %909 = vmatprep.subr.bf16.mxu1 %v2878_v33  ;;  %1048 = vmatpush1.bf16.msra.mxu0 %v2810_v48 }
 0x60e   :  { %1049 = vmatprep.subr.bf16.mxu0 %v2813_v49 }
 0x610   :  { %910 = vmatpush1.bf16.msra.mxu1 %v2883_v34 }
 0x611   :  { %1160 = vmatprep.subr.bf16.mxu1 %v2717_v1  ;;  %1050 = vmatpush1.bf16.msra.mxu0 %v2818_v50 }
 0x612   :  { %v899_v37 = vpop.permute.xlu1 %898  ;;  %1092 = vmatprep.subr.bf16.mxu0 %v2821_v51 }
 0x613   :  { %2111 = vmatmul.mubr.msk.bf16.vlgmr.msra.gmra.mrb[12].mxu1 %vm326_vm2, %v899_v37 }
 0x614   :  { %1161 = vmatpush1.bf16.msra.mxu1 %v2719_v2  ;;  %1192 = vmatprep.mubr.bf16.mxu1 %v2598_v0 }
 0x615   :  { %1162 = vmatprep.subr.bf16.mxu1 %v2729_v5 }
 0x618   :  { %1163 = vmatpush1.bf16.msra.mxu1 %v2731_v6 }
 0x619   :  { %1164 = vmatprep.subr.bf16.mxu1 %v2737_v10 }
 0x61c   :  { %1165 = vmatpush1.bf16.msra.mxu1 %v2740_v12 }
 0x61d   :  { %1166 = vmatprep.subr.bf16.mxu1 %v2746_v14 }
 0x620   :  { %1167 = vmatpush1.bf16.msra.mxu1 %v2748_v15 }
 0x621   :  { %1232 = vmatprep.subr.bf16.mxu1 %v2790_v42 }
 0x6d6   :  { %v1005_v17 = vpop.f32.mrb[24].mxu0 }
 0x6d7   :  { %v1012_v20 = vadd.f32 %v1005_v17, %v208_v47  ;;  %v1007_v53 = vpop.f32.mrb[25].mxu0 }
 0x6d8   :  { %v1013_v55 = vadd.f32 %v1007_v53, %v210_v52  ;;  %v1009_v27 = vpop.f32.mrb[26].mxu0 }
 0x6d9   :  { %v2115_v57 = vmul.f32 -1.442695, %v1012_v20  ;;  %v1010_v59 = vpop.f32.mrb[27].mxu0 }
 0x6da   :  { %v2116_v52 = vmul.f32 -1.442695, %v1013_v55 }
 0x6db   :  { %2341 = vpow2.f32 %v2115_v57 }
 0x6dc   :  { %2343 = vtanh.f32 %v1013_v55 }
 0x6e5   :  { %v2342_v61 = vpop.eup %2341 }
 0x6e6   :  { %v1017_v29 = vadd.f32 1.0, %v2342_v61  ;;  %v937_v40 = vpop.f32.mrb[12].mxu1  ;;  %v2344_v7 = vpop.eup %2343 }
 0x6e7   :  { %v2178_v63 = vadd.f32 %v937_v40, %v2911_v54  ;;  %v939_v36 = vpop.f32.mrb[13].mxu1 }
 0x6e8   :  { %2345 = vrcp.f32 %v1017_v29  ;;  %v941_v4 = vpop.f32.mrb[14].mxu1  ;;  %v2179_v56 = vadd.f32 %v939_v36, %v2916_v62 }
 0x6e9   :  { %v2112_v25 = vmul.f32 -1.442695, %v2178_v63  ;;  %v942_v58 = vpop.f32.mrb[15].mxu1 }
 0x6ea   :  { %v2113_v20 = vmul.f32 -1.442695, %v2179_v56 }
 0x6eb   :  { %2347 = vpow2.f32 %v2112_v25 }
 0x6ec   :  { %2349 = vtanh.f32 %v2179_v56 }
 0x6f2   :  { %v2346_v3 = vpop.eup %2345 }
 0x6f3   :  { %v1028_v35 = vmul.f32 %v2346_v3, %v2344_v7  ;;  %v1027_v27 = vmul.f32 %v2346_v3, %v2969_v60 }
 0x6f5   :  { %v2348_v38 = vpop.eup %2347  ;;  %1030 = vrot.lane.b32.xlu0 %v1028_v35, %s2599_s3 }
 0x6f6   :  { %v949_v39 = vadd.f32 1.0, %v2348_v38  ;;  %v2350_v41 = vpop.eup %2349 }
 0x6f8   :  { %2351 = vrcp.f32 %v949_v39 }
 0x6f9   :  { %2353 = vpow2.f32 %v2116_v52 }
 0x6fa   :  { %2355 = vpow2.f32 %v2113_v20 }
 0x702   :  { %v2352_v37 = vpop.eup %2351 }
 0x703   :  { %v960_v47 = vmul.f32 %v2352_v37, %v2350_v41  ;;  %v2354_v17 = vpop.eup %2353  ;;  %v959_v55 = vmul.f32 %v2352_v37, %v2973_v18 }
 0x704   :  { %v1024_v53 = vadd.f32 1.0, %v2354_v17  ;;  %v2356_v61 = vpop.eup %2355 }
 0x705   :  { %962 = vrot.lane.b32.xlu1 %v960_v47, %s2599_s3  ;;  %v956_v63 = vadd.f32 1.0, %v2356_v61 }
 0x706   :  { %2357 = vrcp.f32 %v1024_v53 }
 0x710   :  { %v2358_v29 = vpop.eup %2357 }
 0x767   :  { %v1031_v57 = vpop.permute.xlu0 %1030 }
 0x768   :  { %v3017_v59 = vadd.f32 %v1031_v57, %v1027_v27 }
 0x76a   :  { %2359 = vtanh.f32 %v3017_v59 }
 0x76b   :  { %2361 = vrcp.f32 %v956_v63 }
 0x774   :  { %v2360_v40 = vpop.eup %2359 }
 0x775   :  { %v1035_v36 = vmul.f32 %v2360_v40, %v2358_v29  ;;  %v2362_v60 = vpop.eup %2361 }
 0x777   :  { %v963_v4 = vpop.permute.xlu1 %962  ;;  %v1036_v25 = vpack.c.bf16 %v1035_v36, %v1035_v36 }
 0x778   :  { %v3021_v58 = vadd.f32 %v963_v4, %v959_v55 }
 0x779   :  { %1038 = vrot.lane.b32.xlu0 %v1036_v25, %s2599_s3 }
 0x77a   :  { %2363 = vtanh.f32 %v3021_v58 }
 0x784   :  { %v2364_v7 = vpop.eup %2363 }
 0x785   :  { %v967_v3 = vmul.f32 %v2364_v7, %v2362_v60 }
 0x787   :  { %v968_v56 = vpack.c.bf16 %v967_v3, %v967_v3 }
 0x789   :  { %1087 = vrot.lane.b32.xlu1 %v968_v56, %s2599_s3 }
 0x7eb   :  { %v1039_v35 = vpop.permute.xlu0 %1038 }
 0x7ec   :  { %2117 = vmatmul.mubr.msk.bf16.vlgmr.msra.gmra.mrb[28].mxu0 %vm326_vm2, %v1039_v35  ;;  %2121 = vmatmul.mubr.msk.bf16.vlgmr.msra.gmra.mrb[16].mxu1 %vm326_vm2, %v1039_v35 }
 0x7ed   :  { %1093 = vmatpush1.bf16.msra.mxu0 %v2858_v26  ;;  %1124 = vmatprep.mubr.bf16.mxu0 %v2598_v0 }
 0x7ee   :  { %1094 = vmatprep.subr.bf16.mxu0 %v2860_v28  ;;  %1233 = vmatpush1.bf16.msra.mxu1 %v2792_v43 }
 0x7ef   :  { %1234 = vmatprep.subr.bf16.mxu1 %v2794_v44  ;;  %1264 = vmatprep.mubr.bf16.mxu1 %v2598_v0 }
 0x7f1   :  { %1095 = vmatpush1.bf16.msra.mxu0 %v2865_v30 }
 0x7f2   :  { %1096 = vmatprep.subr.bf16.mxu0 %v2869_v31  ;;  %1235 = vmatpush1.bf16.msra.mxu1 %v2800_v45 }
 0x7f3   :  { %1236 = vmatprep.subr.bf16.mxu1 %v2803_v46 }
 0x7f5   :  { %1097 = vmatpush1.bf16.msra.mxu0 %v2875_v32 }
 0x7f6   :  { %1098 = vmatprep.subr.bf16.mxu0 %v2878_v33  ;;  %1237 = vmatpush1.bf16.msra.mxu1 %v2810_v48 }
 0x7f7   :  { %1238 = vmatprep.subr.bf16.mxu1 %v2813_v49 }
 0x7f9   :  { %1099 = vmatpush1.bf16.msra.mxu0 %v2883_v34 }
 0x7fa   :  { %1349 = vmatprep.subr.bf16.mxu0 %v2717_v1  ;;  %1239 = vmatpush1.bf16.msra.mxu1 %v2818_v50  ;;  %v214_v1 = vadd.f32 %v2842_v8, %v2774_v21 }
 0x7fb   :  { %v1088_v18 = vpop.permute.xlu1 %1087  ;;  %1281 = vmatprep.subr.bf16.mxu1 %v2821_v51 }
 0x7fc   :  { %2118 = vmatmul.mubr.msk.bf16.vlgmr.msra.gmra.mrb[28].mxu0 %vm326_vm2, %v1088_v18 }
 0x7fd   :  { %1350 = vmatpush1.bf16.msra.mxu0 %v2719_v2  ;;  %1381 = vmatprep.mubr.bf16.mxu0 %v2598_v0  ;;  %v216_v2 = vadd.f32 %v2844_v9, %v2778_v23 }
 0x7fe   :  { %1351 = vmatprep.subr.bf16.mxu0 %v2729_v5 }
 0x801   :  { %1352 = vmatpush1.bf16.msra.mxu0 %v2731_v6 }
 0x802   :  { %1353 = vmatprep.subr.bf16.mxu0 %v2737_v10 }
 0x805   :  { %1354 = vmatpush1.bf16.msra.mxu0 %v2740_v12 }
 0x806   :  { %1355 = vmatprep.subr.bf16.mxu0 %v2746_v14 }
 0x809   :  { %1356 = vmatpush1.bf16.msra.mxu0 %v2748_v15 }
 0x80a   :  { %1421 = vmatprep.subr.bf16.mxu0 %v2790_v42 }
 0x8bf   :  { %v1194_v38 = vpop.f32.mrb[16].mxu1 }
 0x8c0   :  { %v1201_v5 = vadd.f32 %v1194_v38, %v214_v1  ;;  %v1196_v39 = vpop.f32.mrb[17].mxu1 }
 0x8c1   :  { %v1202_v6 = vadd.f32 %v1196_v39, %v216_v2  ;;  %v1198_v41 = vpop.f32.mrb[18].mxu1 }
 0x8c2   :  { %v2122_v10 = vmul.f32 -1.442695, %v1201_v5  ;;  %v1199_v37 = vpop.f32.mrb[19].mxu1 }
 0x8c3   :  { %v2123_v55 = vmul.f32 -1.442695, %v1202_v6 }
 0x8c4   :  { %2365 = vpow2.f32 %v2122_v10 }
 0x8c5   :  { %2367 = vtanh.f32 %v1202_v6 }
 0x8ce   :  { %v2366_v12 = vpop.eup %2365 }
 0x8cf   :  { %v1206_v14 = vadd.f32 1.0, %v2366_v12  ;;  %v1126_v47 = vpop.f32.mrb[28].mxu0  ;;  %v2368_v9 = vpop.eup %2367 }
 0x8d0   :  { %v2180_v15 = vadd.f32 %v1126_v47, %v2911_v54  ;;  %v1128_v52 = vpop.f32.mrb[29].mxu0  ;;  %v218_v47 = vadd.f32 %v2846_v11, %v2774_v21 }
 0x8d1   :  { %2369 = vrcp.f32 %v1206_v14  ;;  %v1130_v8 = vpop.f32.mrb[30].mxu0  ;;  %v2181_v27 = vadd.f32 %v1128_v52, %v2916_v62 }
 0x8d2   :  { %v2119_v17 = vmul.f32 -1.442695, %v2180_v15  ;;  %v1131_v20 = vpop.f32.mrb[31].mxu0  ;;  %v220_v15 = vadd.f32 %v2848_v13, %v2778_v23 }
 0x8d3   :  { %v2120_v25 = vmul.f32 -1.442695, %v2181_v27 }
 0x8d4   :  { %2371 = vpow2.f32 %v2119_v17 }
 0x8d5   :  { %2373 = vtanh.f32 %v2181_v27 }
 0x8db   :  { %v2370_v53 = vpop.eup %2369 }
 0x8dc   :  { %v1217_v57 = vmul.f32 %v2370_v53, %v2368_v9  ;;  %v1216_v7 = vmul.f32 %v2370_v53, %v3017_v59 }
 0x8de   :  { %v2372_v61 = vpop.eup %2371  ;;  %1219 = vrot.lane.b32.xlu0 %v1217_v57, %s2599_s3 }
 0x8df   :  { %v1138_v29 = vadd.f32 1.0, %v2372_v61  ;;  %v2374_v40 = vpop.eup %2373 }
 0x8e1   :  { %2375 = vrcp.f32 %v1138_v29 }
 0x8e2   :  { %2377 = vpow2.f32 %v2123_v55 }
 0x8e3   :  { %2379 = vpow2.f32 %v2120_v25 }
 0x8eb   :  { %v2376_v63 = vpop.eup %2375 }
 0x8ec   :  { %v1149_v36 = vmul.f32 %v2376_v63, %v2374_v40  ;;  %v2378_v4 = vpop.eup %2377  ;;  %v1148_v5 = vmul.f32 %v2376_v63, %v3021_v58  ;;  %v3116_v58 = vld [vmem:[#allocation3 + $0x30] ss:$8 sps:$4 sm:$0xff]  }
 0x8ed   :  { %v1213_v60 = vadd.f32 1.0, %v2378_v4  ;;  %v2380_v35 = vpop.eup %2379 }
 0x8ee   :  { %1151 = vrot.lane.b32.xlu1 %v1149_v36, %s2599_s3  ;;  %v1145_v2 = vadd.f32 1.0, %v2380_v35 }
 0x8ef   :  { %2381 = vrcp.f32 %v1213_v60 }
 0x8f9   :  { %v2382_v18 = vpop.eup %2381 }
 0x950   :  { %v1220_v3 = vpop.permute.xlu0 %1219 }
 0x951   :  { %v3065_v56 = vadd.f32 %v1220_v3, %v1216_v7 }
 0x953   :  { %2383 = vtanh.f32 %v3065_v56 }
 0x954   :  { %2385 = vrcp.f32 %v1145_v2 }
 0x95d   :  { %v2384_v1 = vpop.eup %2383 }
 0x95e   :  { %v1224_v38 = vmul.f32 %v2384_v1, %v2382_v18  ;;  %v2386_v59 = vpop.eup %2385 }
 0x960   :  { %v1152_v39 = vpop.permute.xlu1 %1151  ;;  %v1225_v6 = vpack.c.bf16 %v1224_v38, %v1224_v38 }
 0x961   :  { %v3069_v41 = vadd.f32 %v1152_v39, %v1148_v5 }
 0x962   :  { %1227 = vrot.lane.b32.xlu0 %v1225_v6, %s2599_s3 }
 0x963   :  { %2387 = vtanh.f32 %v3069_v41 }
 0x96d   :  { %v2388_v10 = vpop.eup %2387 }
 0x96e   :  { %v1156_v37 = vmul.f32 %v2388_v10, %v2386_v59 }
 0x970   :  { %v1157_v12 = vpack.c.bf16 %v1156_v37, %v1156_v37 }
 0x972   :  { %1276 = vrot.lane.b32.xlu1 %v1157_v12, %s2599_s3 }
 0x9d4   :  { %v1228_v14 = vpop.permute.xlu0 %1227 }
 0x9d5   :  { %2124 = vmatmul.mubr.msk.bf16.vlgmr.msra.gmra.mrb[20].mxu1 %vm326_vm2, %v1228_v14  ;;  %2128 = vmatmul.mubr.msk.bf16.vlgmr.msra.gmra.mrb[32].mxu0 %vm326_vm2, %v1228_v14 }
 0x9d6   :  { %1282 = vmatpush1.bf16.msra.mxu1 %v2858_v26  ;;  %1313 = vmatprep.mubr.bf16.mxu1 %v2598_v0 }
 0x9d7   :  { %1283 = vmatprep.subr.bf16.mxu1 %v2860_v28  ;;  %1422 = vmatpush1.bf16.msra.mxu0 %v2792_v43  ;;  %v3091_v43 = vld [vmem:[#allocation3 + $0x4] ss:$8 sps:$4 sm:$0xff]  }
 0x9d8   :  { %1423 = vmatprep.subr.bf16.mxu0 %v2794_v44  ;;  %1453 = vmatprep.mubr.bf16.mxu0 %v2598_v0 }
 0x9da   :  { %1284 = vmatpush1.bf16.msra.mxu1 %v2865_v30 }
 0x9db   :  { %1285 = vmatprep.subr.bf16.mxu1 %v2869_v31  ;;  %1424 = vmatpush1.bf16.msra.mxu0 %v2800_v45  ;;  %v3097_v45 = vld [vmem:[#allocation3] ss:$8 sps:$4 sm:$0xff]  }
 0x9dc   :  { %1425 = vmatprep.subr.bf16.mxu0 %v2803_v46  ;;  %v3101_v46 = vld [vmem:[#allocation3 + $0x14] ss:$8 sps:$4 sm:$0xff]  }
 0x9de   :  { %1286 = vmatpush1.bf16.msra.mxu1 %v2875_v32 }
 0x9df   :  { %1287 = vmatprep.subr.bf16.mxu1 %v2878_v33  ;;  %1426 = vmatpush1.bf16.msra.mxu0 %v2810_v48  ;;  %v3104_v48 = vld [vmem:[#allocation3 + $0x10] ss:$8 sps:$4 sm:$0xff]  }
 0x9e0   :  { %1427 = vmatprep.subr.bf16.mxu0 %v2813_v49  ;;  %v3107_v49 = vld [vmem:[#allocation3 + $0x24] ss:$8 sps:$4 sm:$0xff]  }
 0x9e2   :  { %1288 = vmatpush1.bf16.msra.mxu1 %v2883_v34 }
 0x9e3   :  { %1538 = vmatprep.subr.bf16.mxu1 %v3091_v43  ;;  %1428 = vmatpush1.bf16.msra.mxu0 %v2818_v50  ;;  %v3110_v50 = vld [vmem:[#allocation3 + $0x20] ss:$8 sps:$4 sm:$0xff]  }
 0x9e4   :  { %v1277_v44 = vpop.permute.xlu1 %1276  ;;  %1470 = vmatprep.subr.bf16.mxu0 %v2821_v51  ;;  %v3113_v51 = vld [vmem:[#allocation3 + $0x34] ss:$8 sps:$4 sm:$0xff]  }
 0x9e5   :  { %2125 = vmatmul.mubr.msk.bf16.vlgmr.msra.gmra.mrb[20].mxu1 %vm326_vm2, %v1277_v44 }
 0x9e6   :  { %1539 = vmatpush1.bf16.msra.mxu1 %v3097_v45  ;;  %1570 = vmatprep.mubr.bf16.mxu1 %v2598_v0 }
 0x9e7   :  { %1540 = vmatprep.subr.bf16.mxu1 %v3101_v46 }
 0x9ea   :  { %1541 = vmatpush1.bf16.msra.mxu1 %v3104_v48 }
 0x9eb   :  { %1542 = vmatprep.subr.bf16.mxu1 %v3107_v49 }
 0x9ee   :  { %1543 = vmatpush1.bf16.msra.mxu1 %v3110_v50 }
 0x9ef   :  { %1544 = vmatprep.subr.bf16.mxu1 %v3113_v51 }
 0x9f2   :  { %1545 = vmatpush1.bf16.msra.mxu1 %v3116_v58 }
 0x9f3   :  { %1610 = vmatprep.subr.bf16.mxu1 %v2790_v42 }
 0xaa8   :  { %v1383_v52 = vpop.f32.mrb[32].mxu0 }
 0xaa9   :  { %v1390_v8 = vadd.f32 %v1383_v52, %v218_v47  ;;  %v1385_v17 = vpop.f32.mrb[33].mxu0 }
 0xaaa   :  { %v1391_v20 = vadd.f32 %v1385_v17, %v220_v15  ;;  %v1387_v9 = vpop.f32.mrb[34].mxu0 }
 0xaab   :  { %v2129_v53 = vmul.f32 -1.442695, %v1390_v8  ;;  %v1388_v27 = vpop.f32.mrb[35].mxu0 }
 0xaac   :  { %v2130_v1 = vmul.f32 -1.442695, %v1391_v20  ;;  %v3146_v27 = vld [vmem:[#allocation6 + $0x14] ss:$8 sps:$4 sm:$0xff]  }
 0xaad   :  { %2389 = vpow2.f32 %v2129_v53 }
 0xaae   :  { %2391 = vtanh.f32 %v1391_v20 }
 0xab7   :  { %v2390_v57 = vpop.eup %2389 }
 0xab8   :  { %v1395_v61 = vadd.f32 1.0, %v2390_v57  ;;  %v1315_v29 = vpop.f32.mrb[20].mxu1  ;;  %v2392_v13 = vpop.eup %2391  ;;  %v3152_v57 = vld [vmem:[#allocation6 + $0x10] ss:$8 sps:$4 sm:$0xff]  }
 0xab9   :  { %v2182_v42 = vadd.f32 %v1315_v29, %v2911_v54  ;;  %v1317_v40 = vpop.f32.mrb[21].mxu1 }
 0xaba   :  { %2393 = vrcp.f32 %v1395_v61  ;;  %v1319_v11 = vpop.f32.mrb[22].mxu1  ;;  %v2183_v4 = vadd.f32 %v1317_v40, %v2916_v62  ;;  %v3163_v61 = vld [vmem:[#allocation6 + $0x34] ss:$8 sps:$4 sm:$0xff]  }
 0xabb   :  { %v2126_v63 = vmul.f32 -1.442695, %v2182_v42  ;;  %v1320_v36 = vpop.f32.mrb[23].mxu1 }
 0xabc   :  { %v2127_v38 = vmul.f32 -1.442695, %v2183_v4 }
 0xabd   :  { %2395 = vpow2.f32 %v2126_v63 }
 0xabe   :  { %2397 = vtanh.f32 %v2183_v4 }
 0xac4   :  { %v2394_v55 = vpop.eup %2393 }
 0xac5   :  { %v1406_v25 = vmul.f32 %v2394_v55, %v2392_v13  ;;  %v1405_v39 = vmul.f32 %v2394_v55, %v3065_v56 }
 0xac7   :  { %v2396_v60 = vpop.eup %2395  ;;  %1408 = vrot.lane.b32.xlu0 %v1406_v25, %s2599_s3 }
 0xac8   :  { %v1327_v7 = vadd.f32 1.0, %v2396_v60  ;;  %v2398_v3 = vpop.eup %2397 }
 0xaca   :  { %2399 = vrcp.f32 %v1327_v7 }
 0xacb   :  { %2401 = vpow2.f32 %v2130_v1 }
 0xacc   :  { %2403 = vpow2.f32 %v2127_v38 }
 0xad4   :  { %v2400_v35 = vpop.eup %2399 }
 0xad5   :  { %v1338_v18 = vmul.f32 %v2400_v35, %v2398_v3  ;;  %v2402_v2 = vpop.eup %2401  ;;  %v1337_v47 = vmul.f32 %v2400_v35, %v3069_v41  ;;  %v3143_v41 = vld [vmem:[#allocation6] ss:$8 sps:$4 sm:$0xff]  }
 0xad6   :  { %v1402_v5 = vadd.f32 1.0, %v2402_v2  ;;  %v2404_v10 = vpop.eup %2403 }
 0xad7   :  { %1340 = vrot.lane.b32.xlu1 %v1338_v18, %s2599_s3  ;;  %v1334_v14 = vadd.f32 1.0, %v2404_v10 }
 0xad8   :  { %2405 = vrcp.f32 %v1402_v5 }
 0xae2   :  { %v2406_v37 = vpop.eup %2405 }
 0xb39   :  { %v1409_v6 = vpop.permute.xlu0 %1408 }
 0xb3a   :  { %v3129_v59 = vadd.f32 %v1409_v6, %v1405_v39 }
 0xb3c   :  { %2407 = vtanh.f32 %v3129_v59 }
 0xb3d   :  { %2409 = vrcp.f32 %v1334_v14 }
 0xb46   :  { %v2408_v12 = vpop.eup %2407 }
 0xb47   :  { %v1413_v44 = vmul.f32 %v2408_v12, %v2406_v37  ;;  %v2410_v56 = vpop.eup %2409 }
 0xb49   :  { %v1341_v15 = vpop.permute.xlu1 %1340  ;;  %v1414_v52 = vpack.c.bf16 %v1413_v44, %v1413_v44 }
 0xb4a   :  { %v3133_v8 = vadd.f32 %v1341_v15, %v1337_v47 }
 0xb4b   :  { %1416 = vrot.lane.b32.xlu0 %v1414_v52, %s2599_s3 }
 0xb4c   :  { %2411 = vtanh.f32 %v3133_v8 }
 0xb56   :  { %v2412_v17 = vpop.eup %2411 }
 0xb57   :  { %v1345_v20 = vmul.f32 %v2412_v17, %v2410_v56 }
 0xb59   :  { %v1346_v9 = vpack.c.bf16 %v1345_v20, %v1345_v20 }
 0xb5b   :  { %1465 = vrot.lane.b32.xlu1 %v1346_v9, %s2599_s3 }
 0xbbd   :  { %v1417_v53 = vpop.permute.xlu0 %1416 }
 0xbbe   :  { %2131 = vmatmul.mubr.msk.bf16.vlgmr.msra.gmra.mrb[36].mxu0 %vm326_vm2, %v1417_v53  ;;  %2135 = vmatmul.mubr.msk.bf16.vlgmr.msra.gmra.mrb[24].mxu1 %vm326_vm2, %v1417_v53 }
 0xbbf   :  { %1471 = vmatpush1.bf16.msra.mxu0 %v2858_v26  ;;  %1502 = vmatprep.mubr.bf16.mxu0 %v2598_v0  ;;  %v3155_v26 = vld [vmem:[#allocation6 + $0x24] ss:$8 sps:$4 sm:$0xff]  }
 0xbc0   :  { %1472 = vmatprep.subr.bf16.mxu0 %v2860_v28  ;;  %1611 = vmatpush1.bf16.msra.mxu1 %v3143_v41  ;;  %v3160_v28 = vld [vmem:[#allocation6 + $0x20] ss:$8 sps:$4 sm:$0xff]  }
 0xbc1   :  { %1612 = vmatprep.subr.bf16.mxu1 %v3146_v27  ;;  %1642 = vmatprep.mubr.bf16.mxu1 %v2598_v0 }
 0xbc3   :  { %1473 = vmatpush1.bf16.msra.mxu0 %v2865_v30  ;;  %v3168_v30 = vld [vmem:[#allocation6 + $0x30] ss:$8 sps:$4 sm:$0xff]  }
 0xbc4   :  { %1474 = vmatprep.subr.bf16.mxu0 %v2869_v31  ;;  %1613 = vmatpush1.bf16.msra.mxu1 %v3152_v57 }
 0xbc5   :  { %1614 = vmatprep.subr.bf16.mxu1 %v3155_v26 }
 0xbc7   :  { %1475 = vmatpush1.bf16.msra.mxu0 %v2875_v32  ;;  %v3171_v32 = vld [vmem:[#allocation8 + $0x4] ss:$8 sps:$4 sm:$0xff]  }
 0xbc8   :  { %1476 = vmatprep.subr.bf16.mxu0 %v2878_v33  ;;  %1615 = vmatpush1.bf16.msra.mxu1 %v3160_v28  ;;  %v2491_v33 = vld [vmem:[#allocation6 + $0x4] ss:$8 sps:$4 sm:$0xff]  }
 0xbc9   :  { %1616 = vmatprep.subr.bf16.mxu1 %v3163_v61 }
 0xbcb   :  { %1477 = vmatpush1.bf16.msra.mxu0 %v2883_v34  ;;  %v224_v34 = vadd.f32 %v2850_v16, %v2774_v21 }
 0xbcc   :  { %1727 = vmatprep.subr.bf16.mxu0 %v3091_v43  ;;  %1617 = vmatpush1.bf16.msra.mxu1 %v3168_v30  ;;  %v226_v43 = vadd.f32 %v2852_v19, %v2778_v23 }
 0xbcd   :  { %v1466_v31 = vpop.permute.xlu1 %1465  ;;  %1659 = vmatprep.subr.bf16.mxu1 %v3171_v32 }
 0xbce   :  { %2132 = vmatmul.mubr.msk.bf16.vlgmr.msra.gmra.mrb[36].mxu0 %vm326_vm2, %v1466_v31 }
 0xbcf   :  { %1728 = vmatpush1.bf16.msra.mxu0 %v3097_v45  ;;  %1759 = vmatprep.mubr.bf16.mxu0 %v2598_v0 }
 0xbd0   :  { %1729 = vmatprep.subr.bf16.mxu0 %v3101_v46 }
 0xbd3   :  { %1730 = vmatpush1.bf16.msra.mxu0 %v3104_v48 }
 0xbd4   :  { %1731 = vmatprep.subr.bf16.mxu0 %v3107_v49 }
 0xbd7   :  { %1732 = vmatpush1.bf16.msra.mxu0 %v3110_v50 }
 0xbd8   :  { %1733 = vmatprep.subr.bf16.mxu0 %v3113_v51 }
 0xbdb   :  { %1734 = vmatpush1.bf16.msra.mxu0 %v3116_v58 }
 0xbdc   :  { %1799 = vmatprep.subr.bf16.mxu0 %v2491_v33  ;;  %v3207_v33 = vld [vmem:[#allocation8 + $0x14] ss:$8 sps:$4 sm:$0xff]  }
 0xc91   :  { %v1572_v45 = vpop.f32.mrb[24].mxu1 }
 0xc92   :  { %v1579_v46 = vadd.f32 %v1572_v45, %v224_v34  ;;  %v1574_v29 = vpop.f32.mrb[25].mxu1  ;;  %v3213_v34 = vld [vmem:[#allocation8 + $0x10] ss:$8 sps:$4 sm:$0xff]   ;;  %v3221_v45 = vld [vmem:[#allocation8 + $0x20] ss:$8 sps:$4 sm:$0xff]  }
 0xc93   :  { %v1580_v48 = vadd.f32 %v1574_v29, %v226_v43  ;;  %v1576_v42 = vpop.f32.mrb[26].mxu1  ;;  %v3216_v43 = vld [vmem:[#allocation8 + $0x24] ss:$8 sps:$4 sm:$0xff]  }
 0xc94   :  { %v2136_v49 = vmul.f32 -1.442695, %v1579_v46  ;;  %v1577_v40 = vpop.f32.mrb[27].mxu1  ;;  %v230_v46 = vadd.f32 %v2856_v24, %v2778_v23 }
 0xc95   :  { %v2137_v1 = vmul.f32 -1.442695, %v1580_v48 }
 0xc96   :  { %2413 = vpow2.f32 %v2136_v49 }
 0xc97   :  { %2415 = vtanh.f32 %v1580_v48 }
 0xca0   :  { %v2414_v50 = vpop.eup %2413 }
 0xca1   :  { %v1584_v51 = vadd.f32 1.0, %v2414_v50  ;;  %v1504_v11 = vpop.f32.mrb[36].mxu0  ;;  %v2416_v19 = vpop.eup %2415 }
 0xca2   :  { %v2184_v58 = vadd.f32 %v1504_v11, %v2911_v54  ;;  %v1506_v63 = vpop.f32.mrb[37].mxu0 }
 0xca3   :  { %2417 = vrcp.f32 %v1584_v51  ;;  %v1508_v16 = vpop.f32.mrb[38].mxu0  ;;  %v2185_v4 = vadd.f32 %v1506_v63, %v2916_v62 }
 0xca4   :  { %v2133_v36 = vmul.f32 -1.442695, %v2184_v58  ;;  %v1509_v13 = vpop.f32.mrb[39].mxu0 }
 0xca5   :  { %v2134_v38 = vmul.f32 -1.442695, %v2185_v4 }
 0xca6   :  { %2419 = vpow2.f32 %v2133_v36 }
 0xca7   :  { %2421 = vtanh.f32 %v2185_v4 }
 0xcad   :  { %v2418_v55 = vpop.eup %2417 }
 0xcae   :  { %v1595_v25 = vmul.f32 %v2418_v55, %v2416_v19  ;;  %v1594_v39 = vmul.f32 %v2418_v55, %v3129_v59 }
 0xcb0   :  { %v2420_v60 = vpop.eup %2419  ;;  %1597 = vrot.lane.b32.xlu0 %v1595_v25, %s2599_s3 }
 0xcb1   :  { %v1516_v7 = vadd.f32 1.0, %v2420_v60  ;;  %v2422_v3 = vpop.eup %2421 }
 0xcb3   :  { %2423 = vrcp.f32 %v1516_v7 }
 0xcb4   :  { %2425 = vpow2.f32 %v2137_v1 }
 0xcb5   :  { %2427 = vpow2.f32 %v2134_v38 }
 0xcbd   :  { %v2424_v35 = vpop.eup %2423 }
 0xcbe   :  { %v1527_v18 = vmul.f32 %v2424_v35, %v2422_v3  ;;  %v2426_v2 = vpop.eup %2425  ;;  %v1526_v15 = vmul.f32 %v2424_v35, %v3133_v8  ;;  %v3203_v8 = vld [vmem:[#allocation8] ss:$8 sps:$4 sm:$0xff]  }
 0xcbf   :  { %v1591_v5 = vadd.f32 1.0, %v2426_v2  ;;  %v2428_v37 = vpop.eup %2427 }
 0xcc0   :  { %1529 = vrot.lane.b32.xlu1 %v1527_v18, %s2599_s3  ;;  %v1523_v44 = vadd.f32 1.0, %v2428_v37 }
 0xcc1   :  { %2429 = vrcp.f32 %v1591_v5 }
 0xccb   :  { %v2430_v12 = vpop.eup %2429 }
 0xd22   :  { %v1598_v6 = vpop.permute.xlu0 %1597 }
 0xd23   :  { %v3192_v10 = vadd.f32 %v1598_v6, %v1594_v39 }
 0xd25   :  { %2431 = vtanh.f32 %v3192_v10 }
 0xd26   :  { %2433 = vrcp.f32 %v1523_v44 }
 0xd2f   :  { %v2432_v14 = vpop.eup %2431 }
 0xd30   :  { %v1602_v47 = vmul.f32 %v2432_v14, %v2430_v12  ;;  %v2434_v59 = vpop.eup %2433 }
 0xd32   :  { %v1530_v52 = vpop.permute.xlu1 %1529  ;;  %v1603_v56 = vpack.c.bf16 %v1602_v47, %v1602_v47 }
 0xd33   :  { %v3196_v17 = vadd.f32 %v1530_v52, %v1526_v15 }
 0xd34   :  { %1605 = vrot.lane.b32.xlu0 %v1603_v56, %s2599_s3 }
 0xd35   :  { %2435 = vtanh.f32 %v3196_v17 }
 0xd3f   :  { %v2436_v20 = vpop.eup %2435 }
 0xd40   :  { %v1534_v9 = vmul.f32 %v2436_v20, %v2434_v59 }
 0xd42   :  { %v1535_v53 = vpack.c.bf16 %v1534_v9, %v1534_v9 }
 0xd44   :  { %1654 = vrot.lane.b32.xlu1 %v1535_v53, %s2599_s3 }
 0xda6   :  { %v1606_v31 = vpop.permute.xlu0 %1605 }
 0xda7   :  { %2138 = vmatmul.mubr.msk.bf16.vlgmr.msra.gmra.mrb[28].mxu1 %vm326_vm2, %v1606_v31  ;;  %2142 = vmatmul.mubr.msk.bf16.vlgmr.msra.gmra.mrb[40].mxu0 %vm326_vm2, %v1606_v31 }
 0xda8   :  { %1660 = vmatpush1.bf16.msra.mxu1 %v3203_v8  ;;  %1691 = vmatprep.mubr.bf16.mxu1 %v2598_v0 }
 0xda9   :  { %1661 = vmatprep.subr.bf16.mxu1 %v3207_v33  ;;  %1800 = vmatpush1.bf16.msra.mxu0 %v3143_v41  ;;  %v3224_v41 = vld [vmem:[#allocation8 + $0x34] ss:$8 sps:$4 sm:$0xff]  }
 0xdaa   :  { %1801 = vmatprep.subr.bf16.mxu0 %v3146_v27  ;;  %1831 = vmatprep.mubr.bf16.mxu0 %v2598_v0  ;;  %v3229_v27 = vld [vmem:[#allocation8 + $0x30] ss:$8 sps:$4 sm:$0xff]  }
 0xdac   :  { %1662 = vmatpush1.bf16.msra.mxu1 %v3213_v34 }
 0xdad   :  { %1663 = vmatprep.subr.bf16.mxu1 %v3216_v43  ;;  %1802 = vmatpush1.bf16.msra.mxu0 %v3152_v57 }
 0xdae   :  { %1803 = vmatprep.subr.bf16.mxu0 %v3155_v26  ;;  %v228_v26 = vadd.f32 %v2854_v22, %v2774_v21 }
 0xdb0   :  { %1664 = vmatpush1.bf16.msra.mxu1 %v3221_v45 }
 0xdb1   :  { %1665 = vmatprep.subr.bf16.mxu1 %v3224_v41  ;;  %1804 = vmatpush1.bf16.msra.mxu0 %v3160_v28 }
 0xdb2   :  { %1805 = vmatprep.subr.bf16.mxu0 %v3163_v61 }
 0xdb4   :  { %1666 = vmatpush1.bf16.msra.mxu1 %v3229_v27 }
 0xdb5   :  { %1806 = vmatpush1.bf16.msra.mxu0 %v3168_v30 }
 0xdb6   :  { %v1655_v57 = vpop.permute.xlu1 %1654  ;;  %1848 = vmatprep.subr.bf16.mxu0 %v3171_v32 }
 0xdb7   :  { %2139 = vmatmul.mubr.msk.bf16.vlgmr.msra.gmra.mrb[28].mxu1 %vm326_vm2, %v1655_v57 }
 0xe7a   :  { %v1761_v28 = vpop.f32.mrb[40].mxu0 }
 0xe7b   :  { %v1768_v29 = vadd.f32 %v1761_v28, %v228_v26  ;;  %v1763_v61 = vpop.f32.mrb[41].mxu0 }
 0xe7c   :  { %v1769_v48 = vadd.f32 %v1763_v61, %v230_v46  ;;  %v1765_v42 = vpop.f32.mrb[42].mxu0 }
 0xe7d   :  { %v2143_v49 = vmul.f32 -1.442695, %v1768_v29  ;;  %v1766_v40 = vpop.f32.mrb[43].mxu0 }
 0xe7e   :  { %v2144_v25 = vmul.f32 -1.442695, %v1769_v48 }
 0xe7f   :  { %2437 = vpow2.f32 %v2143_v49  ;;  %v2149_v49 = vld [vmem:[%s3308_s7] ss:$0 sm:$0xff] }
 0xe80   :  { %2439 = vtanh.f32 %v1769_v48 }
 0xe89   :  { %v2438_v30 = vpop.eup %2437 }
 0xe8a   :  { %v1773_v50 = vadd.f32 1.0, %v2438_v30  ;;  %v1693_v51 = vpop.f32.mrb[28].mxu1  ;;  %v2440_v23 = vpop.eup %2439 }
 0xe8b   :  { %v2186_v32 = vadd.f32 %v1693_v51, %v2911_v54  ;;  %v1695_v11 = vpop.f32.mrb[29].mxu1 }
 0xe8c   :  { %2441 = vrcp.f32 %v1773_v50  ;;  %v1697_v21 = vpop.f32.mrb[30].mxu1  ;;  %v2187_v63 = vadd.f32 %v1695_v11, %v2916_v62 }
 0xe8d   :  { %v2140_v22 = vmul.f32 -1.442695, %v2186_v32  ;;  %v1698_v58 = vpop.f32.mrb[31].mxu1  ;;  %v2150_v21 = vld [vmem:[%s3309_s8] ss:$0 sm:$0xff] }
 0xe8e   :  { %v2141_v7 = vmul.f32 -1.442695, %v2187_v63  ;;  %v2600_v58 = vmov 0.0  }
 0xe8f   :  { %2443 = vpow2.f32 %v2140_v22  ;;  %v2277_v22 = vld [vmem:[%s3310_s9] sm:$0xff]   ;;  %2162 = vmatprep.subr.bf16.mxu1 %v2600_v58  ;;  %2170 = vmatprep.mubr.msk.bf16.mxu1 %vm2601_vm3, %v2600_v58 }
 0xe90   :  { %2445 = vtanh.f32 %v2187_v63  ;;  %2163 = vmatpush3.bf16.msra.mxu1 %v2277_v22  ;;  %v2280_v63 = vld [vmem:[%s3310_s9 + $0x18] sm:$0xff]  }
 0xe91   :  { %2164 = vmatprep.subr.bf16.mxu1 %v2600_v58 }
 0xe96   :  { %v2442_v24 = vpop.eup %2441 }
 0xe97   :  { %v1784_v16 = vmul.f32 %v2442_v24, %v2440_v23  ;;  %v1783_v35 = vmul.f32 %v2442_v24, %v3192_v10  ;;  %v2278_v23 = vld [vmem:[%s3310_s9 + $0x8] sm:$0xff]   ;;  %v2279_v24 = vld [vmem:[%s3310_s9 + $0x10] sm:$0xff]  }
 0xe98   :  { %2165 = vmatpush3.bf16.msra.mxu1 %v2278_v23 }
 0xe99   :  { %v2444_v36 = vpop.eup %2443  ;;  %1786 = vrot.lane.b32.xlu0 %v1784_v16, %s2599_s3  ;;  %2166 = vmatprep.subr.bf16.mxu1 %v2600_v58 }
 0xe9a   :  { %v1705_v13 = vadd.f32 1.0, %v2444_v36  ;;  %v2446_v19 = vpop.eup %2445 }
 0xe9c   :  { %2447 = vrcp.f32 %v1705_v13  ;;  %2167 = vmatpush3.bf16.msra.mxu1 %v2279_v24 }
 0xe9d   :  { %2449 = vpow2.f32 %v2144_v25  ;;  %2168 = vmatprep.subr.bf16.mxu1 %v2600_v58 }
 0xe9e   :  { %2451 = vpow2.f32 %v2141_v7 }
 0xea0   :  { %2169 = vmatpush3.bf16.msra.mxu1 %v2280_v63 }
 0xea6   :  { %v2448_v55 = vpop.eup %2447 }
 0xea7   :  { %v1716_v4 = vmul.f32 %v2448_v55, %v2446_v19  ;;  %v2450_v60 = vpop.eup %2449  ;;  %v1715_v37 = vmul.f32 %v2448_v55, %v3196_v17 }
 0xea8   :  { %v1780_v3 = vadd.f32 1.0, %v2450_v60  ;;  %v2452_v2 = vpop.eup %2451 }
 0xea9   :  { %1718 = vrot.lane.b32.xlu1 %v1716_v4, %s2599_s3  ;;  %v1712_v39 = vadd.f32 1.0, %v2452_v2 }
 0xeaa   :  { %2453 = vrcp.f32 %v1780_v3 }
 0xeb4   :  { %v2454_v38 = vpop.eup %2453 }
 0xf0b   :  { %v1787_v18 = vpop.permute.xlu0 %1786 }
 0xf0c   :  { %v1789_v1 = vadd.f32 %v1787_v18, %v1783_v35  ;;  %v2151_v18 = vld [vmem:[%s3311_s10] ss:$0 sm:$0xff] }
 0xf0e   :  { %2455 = vtanh.f32 %v1789_v1 }
 0xf0f   :  { %2457 = vrcp.f32 %v1712_v39 }
 0xf18   :  { %v2456_v5 = vpop.eup %2455 }
 0xf19   :  { %v1791_v6 = vmul.f32 %v2456_v5, %v2454_v38  ;;  %v2458_v10 = vpop.eup %2457 }
 0xf1b   :  { %v1719_v12 = vpop.permute.xlu1 %1718  ;;  %v1792_v14 = vpack.c.bf16 %v1791_v6, %v1791_v6 }
 0xf1c   :  { %v1721_v44 = vadd.f32 %v1719_v12, %v1715_v37 }
 0xf1d   :  { %1794 = vrot.lane.b32.xlu0 %v1792_v14, %s2599_s3 }
 0xf1e   :  { %2459 = vtanh.f32 %v1721_v44 }
 0xf28   :  { %v2460_v47 = vpop.eup %2459 }
 0xf29   :  { %v1723_v15 = vmul.f32 %v2460_v47, %v2458_v10 }
 0xf2b   :  { %v1724_v52 = vpack.c.bf16 %v1723_v15, %v1723_v15 }
 0xf2d   :  { %1843 = vrot.lane.b32.xlu1 %v1724_v52, %s2599_s3 }
 0xf8f   :  { %v1795_v56 = vpop.permute.xlu0 %1794 }
 0xf90   :  { %2145 = vmatmul.mubr.msk.bf16.vlgmr.msra.gmra.mrb[44].mxu0 %vm326_vm2, %v1795_v56 }
 0xf91   :  { %1849 = vmatpush1.bf16.msra.mxu0 %v3203_v8  ;;  %1880 = vmatprep.mubr.bf16.mxu0 %v2598_v0 }
 0xf92   :  { %1850 = vmatprep.subr.bf16.mxu0 %v3207_v33 }
 0xf95   :  { %1851 = vmatpush1.bf16.msra.mxu0 %v3213_v34 }
 0xf96   :  { %1852 = vmatprep.subr.bf16.mxu0 %v3216_v43 }
 0xf99   :  { %1853 = vmatpush1.bf16.msra.mxu0 %v3221_v45 }
 0xf9a   :  { %1854 = vmatprep.subr.bf16.mxu0 %v3224_v41 }
 0xf9d   :  { %1855 = vmatpush1.bf16.msra.mxu0 %v3229_v27 }
 0xf9f   :  { %v1844_v17 = vpop.permute.xlu1 %1843 }
 0xfa0   :  { %2146 = vmatmul.mubr.msk.bf16.vlgmr.msra.gmra.mrb[44].mxu0 %vm326_vm2, %v1844_v17 }
0x1073   :  { %v1882_v59 = vpop.f32.mrb[44].mxu0 }
0x1074   :  { %v2188_v20 = vadd.f32 %v1882_v59, %v2911_v54  ;;  %v1884_v9 = vpop.f32.mrb[45].mxu0 }
0x1075   :  { %v1886_v0 = vpop.f32.mrb[46].mxu0  ;;  %v2189_v8 = vadd.f32 %v1884_v9, %v2916_v62 }
0x1076   :  { %v2147_v53 = vmul.f32 -1.442695, %v2188_v20  ;;  %v1887_v31 = vpop.f32.mrb[47].mxu0 }
0x1077   :  { %v2148_v27 = vmul.f32 -1.442695, %v2189_v8 }
0x1078   :  { %2461 = vpow2.f32 %v2147_v53 }
0x1079   :  { %2463 = vtanh.f32 %v2189_v8 }
0x1082   :  { %v2462_v33 = vpop.eup %2461 }
0x1083   :  { %v1894_v34 = vadd.f32 1.0, %v2462_v33  ;;  %v2464_v43 = vpop.eup %2463 }
0x1085   :  { %2465 = vrcp.f32 %v1894_v34 }
0x1086   :  { %2467 = vpow2.f32 %v2148_v27 }
0x108f   :  { %v2466_v45 = vpop.eup %2465 }
0x1090   :  { %v1905_v41 = vmul.f32 %v2466_v45, %v2464_v43  ;;  %v2468_v57 = vpop.eup %2467  ;;  %v1904_v26 = vmul.f32 %v2466_v45, %v1721_v44 }
0x1091   :  { %v1901_v54 = vadd.f32 1.0, %v2468_v57 }
0x1092   :  { %1907 = vrot.lane.b32.xlu0 %v1905_v41, %s2599_s3 }
0x1093   :  { %2469 = vrcp.f32 %v1901_v54 }
0x109d   :  { %v2470_v29 = vpop.eup %2469 }
0x1104   :  { %v1908_v46 = vpop.permute.xlu0 %1907 }
0x1105   :  { %v1910_v28 = vadd.f32 %v1908_v46, %v1904_v26 }
0x1107   :  { %2471 = vtanh.f32 %v1910_v28 }
0x1111   :  { %v2472_v62 = vpop.eup %2471 }
0x1112   :  { %v1912_v61 = vmul.f32 %v2472_v62, %v2470_v29 }
0x1114   :  { %1914 = vrot.lane.b32.xlu1 %v1912_v61, %s2599_s3 }
0x1186   :  { %v1915_v48 = vpop.permute.xlu1 %1914 }
0x1187   :  { %v1917_v42 = vsel %vm326_vm2, %v1915_v48, 0.0 }
0x1188   :  { %1918 = vadd.xlane.f32.xlu0 %v1917_v42 }
0x119e   :  { %1941 = vrot.lane.b32.xlu0 %v2149_v49, %s2599_s3 }
0x1215   :  { %v1919_v40 = vpop.xlane.xlu0 %1918 }
0x1216   :  { %v1921_v30 = vmul.f32 0.015625, %v1919_v40 }
0x1218   :  { %v1922_v50 = vsub.f32 %v1912_v61, %v1921_v30 }
0x1219   :  { %v1942_v55 = vpop.permute.xlu0 %1941 }
0x121a   :  { %v1923_v51 = vmul.f32 %v1922_v50, %v1922_v50 }
0x121c   :  { %1925 = vrot.lane.b32.xlu1 %v1923_v51, %s2599_s3 }
0x128e   :  { %v1926_v32 = vpop.permute.xlu1 %1925 }
0x128f   :  { %v1928_v11 = vsel %vm326_vm2, %v1926_v32, 0.0 }
0x1290   :  { %1929 = vadd.xlane.f32.xlu1 %v1928_v11 }
0x12a1   :  { %1951 = vrot.lane.b32.xlu1 %v2150_v21, %s2599_s3 }
0x131d   :  { %v1930_v16 = vpop.xlane.xlu1 %1929 }
0x131e   :  { %v1931_v36 = vmul.f32 0.015625, %v1930_v16 }
0x1320   :  { %v1932_v13 = vadd.f32 1e-05, %v1931_v36 }
0x1321   :  { %v1952_v25 = vpop.permute.xlu1 %1951 }
0x1322   :  { %2473 = vrsqrt.f32 %v1932_v13 }
0x132c   :  { %v2474_v19 = vpop.eup %2473 }
0x132d   :  { %v1934_v4 = vmul.f32 %v2474_v19, %v1922_v50 }
0x132f   :  { %v1944_v60 = vmul.f32 %v1942_v55, %v1934_v4 }
0x1331   :  { %v1954_v7 = vadd.f32 %v1952_v25, %v1944_v60 }
0x1333   :  { %v1955_v3 = vpack.c.bf16 %v1954_v7, %v1954_v7 }
0x1335   :  { %1972 = vrot.lane.b32.xlu0 %v1955_v3, %s2599_s3 }
0x13a7   :  { %v1973_v35 = vpop.permute.xlu0 %1972 }
0x13a8   :  { %2171 = vmatmul.mubr.msk.bf16.vlgmr.msra.gmra.mrb[32].mxu1 %vm326_vm2, %v1973_v35 }
0x147b   :  { %v2035_v1 = vpop.f32.mrb[32].mxu1 }
0x147c   :  { %v2036_v2 = vadd.f32 %v2151_v18, %v2035_v1  ;;  %v2172_v38 = vpop.f32.mrb[33].mxu1 }
0x147d   :  { %v2038_v5 = vpop.f32.mrb[34].mxu1 }
0x147e   :  { %2041 = vst [vmem:[#allocation9] sm:$0xff] %v2036_v2  ;;  %v2173_v39 = vpop.f32.mrb[35].mxu1 }
0x147f   :  { %2576 = shalt.err (!%p2573_p0)
}
0x1480   :  { %s2577_s10 = scalar_lea.hbm %s3312_s11, 128 }
0x1481   :  { %p2578_p1 = scmp.ne.s32.totalorder %s3312_s11, %s2577_s10  ;;  %p2581_p2 = scmp.lt.u32.totalorder %s2577_s10, %s3312_s11 }
0x1483   :  { %p2583_p3 = pnand %p2581_p2, %p2578_p1 }
0x1485   :  { %2586 = shalt.err (!%p2583_p3)
}
0x1486   :  { %2051 = dma.vmem_to_hbm [thread:$0]  %s2049_s21, 128, %s3312_s11, [#allocation5]  }
0x1487   :  { %2591 = dma.done.wait [#allocation5], 128  }
0x1488   :  { %2592 = vsyncadd [#allocation5], 4294967168 }
0x1489   :  { %2055 = vsyncpa [#allocation4], 1 }
0x148a   :  { %2056 = vsyncpa [#allocation7], 1 }
0x148b   :  { %2057 = vsyncpa [#allocation5], 1 }

</bundles_post_ra>
